<compile_context>
chip_gen: v7x
topology: tpu7x:2x2x1
jax: 0.10.0
libtpu: 0.0.40
codegen_flags: <defaults>
</compile_context>

<pallas_src>
import math
from functools import partial

import jax
import jax.numpy as jnp
from jax import lax
from jax.experimental import pallas as pl
from jax.experimental.pallas import tpu as pltpu


def _round_up(x, m):
    return (x + m - 1) // m * m


def _graph_layer_kernel(adjT_ref, dhT_ref, dhT_blk_ref, s0T_ref, s1_ref,
                        naT_ref, nbT_ref, vwT_ref, vb_ref, out_ref,
                        *, num_heads, hidden, alpha, eps):
    """One grid step = one block of TM destination nodes (lanes of the transposed
    frame); all heads handled inside.  Everything O(N^2)-shaped stays on the VPU
    or MXU; the EUP only sees O(TM + N) exps per head."""
    adjT = adjT_ref[...].astype(jnp.float32)        # (N, TM) edge multiplicities
    dhT16 = dhT_ref[...]                            # (H*hid, N) bf16, projected nodes
    dhT_blk = dhT_blk_ref[...]                      # (H*hid, TM) f32, this block only
    s0T = s0T_ref[...]                              # (H, TM) f32 destination-node term
    s1 = s1_ref[...]                                # (N, H) f32 source-node term

    tm = adjT.shape[1]
    accT = jnp.zeros((hidden, tm), jnp.float32)

    # H is small & static -> Python unroll (live (N,TM) temporaries per head are
    # independent, only accT is carried).
    for h in range(num_heads):
        s0h = s0T[h:h + 1, :]                       # (1, TM)
        s1h = s1[:, h:h + 1]                        # (N, 1)
        # Separable exp of LeakyReLU (scale already folded into s0/s1):
        #   exp(lrelu(s0+s1)) = select(s0+s1>0, exp(s1)exp(s0), exp(a*s1)exp(a*s0))
        e_pos = jnp.exp(s1h) * jnp.exp(s0h)                         # (N, TM)
        e_neg = jnp.exp(alpha * s1h) * jnp.exp(alpha * s0h)         # (N, TM)
        e = jnp.where(s1h + s0h > 0.0, e_pos, e_neg)                # (N, TM)

        A_T = adjT * e                                              # (N, TM)
        rowsum = jnp.sum(A_T, axis=0, keepdims=True)                # (1, TM)
        zero = rowsum == 0.0                                        # isolated nodes
        inv = pl.reciprocal(jnp.where(zero, 1.0, rowsum), approx=True)

        # Lane-dense aggregation: output is (hid, TM) -> TM lanes lit on the MXU.
        dhT_h = dhT16[h * hidden:(h + 1) * hidden, :]               # (hid, N) bf16
        hpT = jnp.dot(dhT_h, A_T.astype(jnp.bfloat16),
                      preferred_element_type=jnp.float32) * inv     # (hid, TM)
        # Isolated nodes keep their own projected features (identity row in edge_e).
        hpT = jnp.where(zero, dhT_blk[h * hidden:(h + 1) * hidden, :], hpT)
        accT = accT + hpT

    # mean over heads (concat=False), LayerNorm over the feature (sublane) axis
    # (torch.std: unbiased, eps added to std), ReLU, final V linear.
    # TODO(synk): nn.Dropout treated as identity (eval mode); training-mode RNG
    # dropout not implemented.
    mT = accT * (1.0 / num_heads)                                   # (hid, TM)
    mean = jnp.mean(mT, axis=0, keepdims=True)                      # (1, TM)
    d = mT - mean
    var = jnp.sum(d * d, axis=0, keepdims=True) * (1.0 / (hidden - 1))
    std = jnp.sqrt(var)
    # exact divide here (tiny (1,TM) vector) per review correctness note.
    normed = naT_ref[...] * d / (std + eps) + nbT_ref[...]          # (hid, TM)
    relu = jnp.maximum(normed, 0.0)

    # TN dot_general: contract the feature axis of the transposed activations so
    # the result is already in natural (TM, out_pad) lane-dense orientation.
    out = lax.dot_general(relu, vwT_ref[...], (((0,), (0,)), ((), ())),
                          preferred_element_type=jnp.float32)
    out_ref[...] = out + vb_ref[...]


def graph_layer_forward(edge, data, params, *, num_of_nodes, num_of_heads,
                        hidden_features, out_features, alpha, eps=1e-6, tm=None):
    N, H, hid = num_of_nodes, num_of_heads, hidden_features
    in_f = data.shape[1]

    # Row-block size.  Lane-blocked BlockSpecs require the block's lane dim to be
    # a multiple of 128 or cover the full axis, so: single block for small graphs,
    # 128-wide blocks otherwise (>=2 "parallel" steps for megacore when N > 128).
    if tm is None:
        tm = 128 if N > 128 else _round_up(N, 8)
    n_pad = _round_up(N, tm)
    assert tm % 128 == 0 or tm == n_pad, "tm must be a multiple of 128 or cover N"

    # Densified edge multiplicities (duplicate edges sum, matching uncoalesced
    # torch.sparse.mm).  Shipped TRANSPOSED (source nodes on sublanes, destination
    # nodes on lanes) as int8: exact for <=127 duplicate edges, and the smallest
    # possible O(N^2) HBM stream.
    # TODO(synk): for very large N, add flash-style column tiling (online rowsum
    # accumulator over the source-node axis) to bound the (N, TM) working set on
    # v7x's 64 MiB VMEM; unnecessary for the ~100-node graphs this module targets.
    adjT = jnp.zeros((n_pad, n_pad), jnp.float32).at[edge[1], edge[0]].add(1.0)
    adjT = adjT.astype(jnp.int8)

    # ---- hoisted per-node projection (done once, in XLA, not per row block) ----
    W = params["W"].astype(jnp.float32)                         # (H, hid, in)
    wt_all = W.reshape(H * hid, in_f)                           # (H*hid, in)
    b_all = params["Wb"].astype(jnp.float32).reshape(H * hid, 1)
    data_p = jnp.zeros((n_pad, in_f), jnp.float32).at[:N].set(data.astype(jnp.float32))
    dhT = wt_all @ data_p.T + b_all                             # (H*hid, n_pad) f32
    dhT_bf16 = dhT.astype(jnp.bfloat16)                         # matmul RHS/LHS operand

    # ---- hoisted attention scalars (scale folded into a; LeakyReLU commutes) ----
    scale = 1.0 / math.sqrt(hid * H)
    a = params["a"].astype(jnp.float32).reshape(H, 2 * hid) * scale
    a_l, a_r = a[:, :hid], a[:, hid:]                           # (H, hid) each
    dh3 = dhT.reshape(H, hid, n_pad)
    s0T = jnp.einsum("hd,hdn->hn", a_l, dh3)                    # (H, n_pad) dest term
    s1 = jnp.einsum("hd,hdn->nh", a_r, dh3)                     # (n_pad, H) source term

    naT = params["norm_a"].astype(jnp.float32).reshape(hid, 1)
    nbT = params["norm_b"].astype(jnp.float32).reshape(hid, 1)

    # Lane-dense output: pad out_features up to a multiple of 128, slice after.
    out_pad = _round_up(out_features, 128)
    vw_t = jnp.zeros((hid, out_pad), jnp.float32).at[:, :out_features].set(
        params["Vw"].astype(jnp.float32).T)
    vb_p = jnp.zeros((1, out_pad), jnp.float32).at[:, :out_features].set(
        params["Vb"].astype(jnp.float32).reshape(1, out_features))

    kernel = partial(_graph_layer_kernel, num_heads=H, hidden=hid,
                     alpha=alpha, eps=eps)

    # Generation-aware VMEM budget (64 MiB on v7x vs 128 MiB on v5e/v6e).
    try:
        vmem_cap = pltpu.get_tpu_info().vmem_capacity_bytes
    except Exception:
        vmem_cap = 64 * 1024 * 1024
    vmem_limit = int(min(0.75 * vmem_cap, 96 * 1024 * 1024))

    out = pl.pallas_call(
        kernel,
        out_shape=jax.ShapeDtypeStruct((n_pad, out_pad), jnp.float32),
        grid=(n_pad // tm,),
        in_specs=[
            pl.BlockSpec((n_pad, tm), lambda i: (0, i)),        # adj^T col block (int8)
            pl.BlockSpec((H * hid, n_pad), lambda i: (0, 0)),   # dh^T all nodes (bf16)
            pl.BlockSpec((H * hid, tm), lambda i: (0, i)),      # dh^T this block (f32)
            pl.BlockSpec((H, tm), lambda i: (0, i)),            # s0 (dest term), block
            pl.BlockSpec((n_pad, H), lambda i: (0, 0)),         # s1 (source term), full
            pl.BlockSpec((hid, 1), lambda i: (0, 0)),           # LayerNorm scale
            pl.BlockSpec((hid, 1), lambda i: (0, 0)),           # LayerNorm bias
            pl.BlockSpec((hid, out_pad), lambda i: (0, 0)),     # V^T, lane-padded
            pl.BlockSpec((1, out_pad), lambda i: (0, 0)),       # V bias, lane-padded
        ],
        out_specs=pl.BlockSpec((tm, out_pad), lambda i: (i, 0)),
        compiler_params=pltpu.CompilerParams(
            dimension_semantics=("parallel",),
            vmem_limit_bytes=vmem_limit,
        ),
    )(adjT, dhT_bf16, dhT, s0T, s1, naT, nbT, vw_t, vb_p)

    return out[:N, :out_features]


def reference_forward(edge, data, params, *, num_of_nodes, num_of_heads,
                      hidden_features, out_features, alpha, eps=1e-6):
    """Pure-JAX f32 re-implementation of the PyTorch forward (concat=False, eval)."""
    N, H, hid = num_of_nodes, num_of_heads, hidden_features
    adj = jnp.zeros((N, N), jnp.float32).at[edge[0], edge[1]].add(1.0)
    outs = []
    for h in range(H):
        w, b = params["W"][h], params["Wb"][h, 0]
        dh = data @ w.T + b
        a = params["a"][h, 0]
        s = dh @ a[:hid].reshape(-1, 1) + (dh @ a[hid:].reshape(-1, 1)).T
        s = jnp.where(s > 0, s, alpha * s)
        e = jnp.exp(s / math.sqrt(hid * H))
        A = adj * e
        rowsum = A.sum(-1, keepdims=True)
        zero = rowsum == 0
        rowsum = jnp.where(zero, 1.0, rowsum)
        A = A + jnp.where(zero, jnp.eye(N, dtype=jnp.float32), 0.0)
        outs.append((A @ dh) / rowsum)
    m = jnp.stack(outs, 0).mean(0)
    mean = m.mean(-1, keepdims=True)
    std = jnp.sqrt(((m - mean) ** 2).sum(-1, keepdims=True) / (hid - 1))
    normed = params["norm_a"] * (m - mean) / (std + eps) + params["norm_b"]
    return jnp.maximum(normed, 0.0) @ params["Vw"].T + params["Vb"]


if __name__ == "__main__":
    # Small shapes consistent with the module (~100-200 node graphs, concat=False).
    # N > 128 so the default tiling gives a 2-step "parallel" grid with padding.
    N, IN, HID, OUT, HEADS, E = 200, 8, 16, 16, 2, 2000
    ALPHA = 0.2

    key = jax.random.PRNGKey(0)
    ks = jax.random.split(key, 10)
    data = jax.random.normal(ks[0], (N, IN), jnp.float32)
    # Sources drawn from [2, N) so nodes 0 and 1 have no outgoing edges ->
    # exercises the isolated-node identity fix-up against the reference.
    edge = jnp.stack([jax.random.randint(ks[1], (E,), 2, N),
                      jax.random.randint(ks[7], (E,), 0, N)], axis=0)

    params = dict(
        W=jax.random.normal(ks[2], (HEADS, HID, IN), jnp.float32) / math.sqrt(IN),
        Wb=jax.random.normal(ks[3], (HEADS, 1, HID), jnp.float32) * 0.1,
        a=jax.random.uniform(ks[4], (HEADS, 1, 2 * HID), jnp.float32),
        norm_a=1.0 + 0.1 * jax.random.normal(ks[8], (HID,), jnp.float32),
        norm_b=0.1 * jax.random.normal(ks[9], (HID,), jnp.float32),
        Vw=jax.random.normal(ks[5], (OUT, HID), jnp.float32) / math.sqrt(HID),
        Vb=jax.random.normal(ks[6], (OUT,), jnp.float32) * 0.1,
    )

    out = graph_layer_forward(edge, data, params, num_of_nodes=N,
                              num_of_heads=HEADS, hidden_features=HID,
                              out_features=OUT, alpha=ALPHA)
    out = jax.block_until_ready(out)

    ref = reference_forward(edge, data, params, num_of_nodes=N,
                            num_of_heads=HEADS, hidden_features=HID,
                            out_features=OUT, alpha=ALPHA)
    assert out.shape == (N, OUT)
    # bf16 aggregation operands + EUP approx reciprocal on the row-sum => bf16-level
    # tolerance vs the pure-f32 reference.
    assert jnp.allclose(out, ref, rtol=5e-2, atol=5e-2), "mismatch vs pure-JAX reference"
    print("KERNEL_OK")
</pallas_src>

<mosaic_0001>
module attributes {stable_mosaic.version = 11 : i64} {
  func.func @_graph_layer_kernel(%arg0: i32, %arg1: memref<256x128xi8, #tpu.memory_space<vmem>>, %arg2: memref<32x256xbf16, #tpu.memory_space<vmem>>, %arg3: memref<32x128xf32, #tpu.memory_space<vmem>>, %arg4: memref<2x128xf32, #tpu.memory_space<vmem>>, %arg5: memref<256x2xf32, #tpu.memory_space<vmem>>, %arg6: memref<16x1xf32, #tpu.memory_space<vmem>>, %arg7: memref<16x1xf32, #tpu.memory_space<vmem>>, %arg8: memref<16x128xf32, #tpu.memory_space<vmem>>, %arg9: memref<1x128xf32, #tpu.memory_space<vmem>>, %arg10: memref<128x128xf32, #tpu.memory_space<vmem>>) attributes {dimension_semantics = [#tpu.dimension_semantics<parallel>], iteration_bounds = array<i64: 2>, scalar_prefetch = 0 : i64, scratch_operands = 0 : i64, tpu.core_type = #tpu.core_type<tc>, window_params = [{transform_indices = @transform_0, window_bounds = array<i64: 256, 128>}, {pipeline_mode = #tpu.pipeline_mode<synchronous>, transform_indices = @transform_1, window_bounds = array<i64: 32, 256>}, {transform_indices = @transform_2, window_bounds = array<i64: 32, 128>}, {transform_indices = @transform_3, window_bounds = array<i64: 2, 128>}, {pipeline_mode = #tpu.pipeline_mode<synchronous>, transform_indices = @transform_4, window_bounds = array<i64: 256, 2>}, {pipeline_mode = #tpu.pipeline_mode<synchronous>, transform_indices = @transform_5, window_bounds = array<i64: 16, 1>}, {pipeline_mode = #tpu.pipeline_mode<synchronous>, transform_indices = @transform_6, window_bounds = array<i64: 16, 1>}, {pipeline_mode = #tpu.pipeline_mode<synchronous>, transform_indices = @transform_7, window_bounds = array<i64: 16, 128>}, {pipeline_mode = #tpu.pipeline_mode<synchronous>, transform_indices = @transform_8, window_bounds = array<i64: 1, 128>}, {transform_indices = @transform_9, window_bounds = array<i64: 128, 128>}]} {
    %c0 = arith.constant 0 : index
    %c0_0 = arith.constant 0 : index
    %0 = vector.load %arg1[%c0, %c0_0] : memref<256x128xi8, #tpu.memory_space<vmem>>, vector<256x128xi8>
    %1 = arith.sitofp %0 : vector<256x128xi8> to vector<256x128xf32>
    %c0_1 = arith.constant 0 : index
    %c0_2 = arith.constant 0 : index
    %2 = vector.load %arg2[%c0_1, %c0_2] : memref<32x256xbf16, #tpu.memory_space<vmem>>, vector<32x256xbf16>
    %c0_3 = arith.constant 0 : index
    %c0_4 = arith.constant 0 : index
    %3 = vector.load %arg3[%c0_3, %c0_4] : memref<32x128xf32, #tpu.memory_space<vmem>>, vector<32x128xf32>
    %c0_5 = arith.constant 0 : index
    %c0_6 = arith.constant 0 : index
    %4 = vector.load %arg4[%c0_5, %c0_6] : memref<2x128xf32, #tpu.memory_space<vmem>>, vector<2x128xf32>
    %c0_7 = arith.constant 0 : index
    %c0_8 = arith.constant 0 : index
    %5 = vector.load %arg5[%c0_7, %c0_8] : memref<256x2xf32, #tpu.memory_space<vmem>>, vector<256x2xf32>
    %cst = arith.constant 0.000000e+00 : f32
    %6 = vector.broadcast %cst : f32 to vector<16x128xf32>
    %7 = vector.extract_strided_slice %4 {offsets = [0, 0], sizes = [1, 128], strides = [1, 1]} : vector<2x128xf32> to vector<1x128xf32>
    %8 = vector.extract_strided_slice %5 {offsets = [0, 0], sizes = [256, 1], strides = [1, 1]} : vector<256x2xf32> to vector<256x1xf32>
    %9 = math.exp %8 : vector<256x1xf32>
    %10 = math.exp %7 : vector<1x128xf32>
    %11 = vector.broadcast %9 : vector<256x1xf32> to vector<256x128xf32>
    %12 = vector.broadcast %10 : vector<1x128xf32> to vector<256x128xf32>
    %13 = arith.mulf %11, %12 : vector<256x128xf32>
    %cst_9 = arith.constant 2.000000e-01 : f32
    %14 = vector.broadcast %cst_9 : f32 to vector<256x1xf32>
    %15 = arith.mulf %14, %8 : vector<256x1xf32>
    %16 = math.exp %15 : vector<256x1xf32>
    %cst_10 = arith.constant 2.000000e-01 : f32
    %17 = vector.broadcast %cst_10 : f32 to vector<1x128xf32>
    %18 = arith.mulf %17, %7 : vector<1x128xf32>
    %19 = math.exp %18 : vector<1x128xf32>
    %20 = vector.broadcast %16 : vector<256x1xf32> to vector<256x128xf32>
    %21 = vector.broadcast %19 : vector<1x128xf32> to vector<256x128xf32>
    %22 = arith.mulf %20, %21 : vector<256x128xf32>
    %23 = vector.broadcast %8 : vector<256x1xf32> to vector<256x128xf32>
    %24 = vector.broadcast %7 : vector<1x128xf32> to vector<256x128xf32>
    %25 = arith.addf %23, %24 : vector<256x128xf32>
    %cst_11 = arith.constant 0.000000e+00 : f32
    %26 = vector.broadcast %cst_11 : f32 to vector<256x128xf32>
    %27 = arith.cmpf ogt, %25, %26 : vector<256x128xf32>
    %28 = arith.select %27, %13, %22 : vector<256x128xi1>, vector<256x128xf32>
    %29 = arith.mulf %1, %28 : vector<256x128xf32>
    %cst_12 = arith.constant dense<0.000000e+00> : vector<128xf32>
    %30 = vector.multi_reduction <add>, %29, %cst_12 [0] : vector<256x128xf32> to vector<128xf32>
    %31 = vector.shape_cast %30 : vector<128xf32> to vector<1x128xf32>
    %cst_13 = arith.constant 0.000000e+00 : f32
    %32 = vector.broadcast %cst_13 : f32 to vector<1x128xf32>
    %33 = arith.cmpf oeq, %31, %32 : vector<1x128xf32>
    %cst_14 = arith.constant 1.000000e+00 : f32
    %34 = vector.broadcast %cst_14 : f32 to vector<1x128xf32>
    %35 = arith.select %33, %34, %31 : vector<1x128xi1>, vector<1x128xf32>
    %36 = tpu.reciprocal %35 {approx = true} : vector<1x128xf32> -> vector<1x128xf32>
    %37 = vector.extract_strided_slice %2 {offsets = [0, 0], sizes = [16, 256], strides = [1, 1]} : vector<32x256xbf16> to vector<16x256xbf16>
    %38 = arith.truncf %29 : vector<256x128xf32> to vector<256x128xbf16>
    %cst_15 = arith.constant dense<0.000000e+00> : vector<16x128xf32>
    %39 = tpu.matmul %37, %38, %cst_15 {dimension_numbers = #tpu.dot_dimension_numbers<[1], [0], [0], [1], [0, 0, 1, 1], [], []>} : vector<16x256xbf16>, vector<256x128xbf16>, vector<16x128xf32> -> vector<16x128xf32>
    %40 = vector.broadcast %36 : vector<1x128xf32> to vector<16x128xf32>
    %41 = arith.mulf %39, %40 : vector<16x128xf32>
    %42 = vector.extract_strided_slice %3 {offsets = [0, 0], sizes = [16, 128], strides = [1, 1]} : vector<32x128xf32> to vector<16x128xf32>
    %43 = vector.shape_cast %33 : vector<1x128xi1> to vector<1x128xi1>
    %44 = vector.broadcast %43 : vector<1x128xi1> to vector<16x128xi1>
    %45 = arith.select %44, %42, %41 : vector<16x128xi1>, vector<16x128xf32>
    %46 = arith.addf %6, %45 : vector<16x128xf32>
    %47 = vector.extract_strided_slice %4 {offsets = [1, 0], sizes = [1, 128], strides = [1, 1]} : vector<2x128xf32> to vector<1x128xf32>
    %48 = vector.extract_strided_slice %5 {offsets = [0, 1], sizes = [256, 1], strides = [1, 1]} : vector<256x2xf32> to vector<256x1xf32>
    %49 = math.exp %48 : vector<256x1xf32>
    %50 = math.exp %47 : vector<1x128xf32>
    %51 = vector.broadcast %49 : vector<256x1xf32> to vector<256x128xf32>
    %52 = vector.broadcast %50 : vector<1x128xf32> to vector<256x128xf32>
    %53 = arith.mulf %51, %52 : vector<256x128xf32>
    %cst_16 = arith.constant 2.000000e-01 : f32
    %54 = vector.broadcast %cst_16 : f32 to vector<256x1xf32>
    %55 = arith.mulf %54, %48 : vector<256x1xf32>
    %56 = math.exp %55 : vector<256x1xf32>
    %cst_17 = arith.constant 2.000000e-01 : f32
    %57 = vector.broadcast %cst_17 : f32 to vector<1x128xf32>
    %58 = arith.mulf %57, %47 : vector<1x128xf32>
    %59 = math.exp %58 : vector<1x128xf32>
    %60 = vector.broadcast %56 : vector<256x1xf32> to vector<256x128xf32>
    %61 = vector.broadcast %59 : vector<1x128xf32> to vector<256x128xf32>
    %62 = arith.mulf %60, %61 : vector<256x128xf32>
    %63 = vector.broadcast %48 : vector<256x1xf32> to vector<256x128xf32>
    %64 = vector.broadcast %47 : vector<1x128xf32> to vector<256x128xf32>
    %65 = arith.addf %63, %64 : vector<256x128xf32>
    %cst_18 = arith.constant 0.000000e+00 : f32
    %66 = vector.broadcast %cst_18 : f32 to vector<256x128xf32>
    %67 = arith.cmpf ogt, %65, %66 : vector<256x128xf32>
    %68 = arith.select %67, %53, %62 : vector<256x128xi1>, vector<256x128xf32>
    %69 = arith.mulf %1, %68 : vector<256x128xf32>
    %cst_19 = arith.constant dense<0.000000e+00> : vector<128xf32>
    %70 = vector.multi_reduction <add>, %69, %cst_19 [0] : vector<256x128xf32> to vector<128xf32>
    %71 = vector.shape_cast %70 : vector<128xf32> to vector<1x128xf32>
    %cst_20 = arith.constant 0.000000e+00 : f32
    %72 = vector.broadcast %cst_20 : f32 to vector<1x128xf32>
    %73 = arith.cmpf oeq, %71, %72 : vector<1x128xf32>
    %cst_21 = arith.constant 1.000000e+00 : f32
    %74 = vector.broadcast %cst_21 : f32 to vector<1x128xf32>
    %75 = arith.select %73, %74, %71 : vector<1x128xi1>, vector<1x128xf32>
    %76 = tpu.reciprocal %75 {approx = true} : vector<1x128xf32> -> vector<1x128xf32>
    %77 = vector.extract_strided_slice %2 {offsets = [16, 0], sizes = [16, 256], strides = [1, 1]} : vector<32x256xbf16> to vector<16x256xbf16>
    %78 = arith.truncf %69 : vector<256x128xf32> to vector<256x128xbf16>
    %cst_22 = arith.constant dense<0.000000e+00> : vector<16x128xf32>
    %79 = tpu.matmul %77, %78, %cst_22 {dimension_numbers = #tpu.dot_dimension_numbers<[1], [0], [0], [1], [0, 0, 1, 1], [], []>} : vector<16x256xbf16>, vector<256x128xbf16>, vector<16x128xf32> -> vector<16x128xf32>
    %80 = vector.broadcast %76 : vector<1x128xf32> to vector<16x128xf32>
    %81 = arith.mulf %79, %80 : vector<16x128xf32>
    %82 = vector.extract_strided_slice %3 {offsets = [16, 0], sizes = [16, 128], strides = [1, 1]} : vector<32x128xf32> to vector<16x128xf32>
    %83 = vector.shape_cast %73 : vector<1x128xi1> to vector<1x128xi1>
    %84 = vector.broadcast %83 : vector<1x128xi1> to vector<16x128xi1>
    %85 = arith.select %84, %82, %81 : vector<16x128xi1>, vector<16x128xf32>
    %86 = arith.addf %46, %85 : vector<16x128xf32>
    %cst_23 = arith.constant 5.000000e-01 : f32
    %87 = vector.broadcast %cst_23 : f32 to vector<16x128xf32>
    %88 = arith.mulf %86, %87 : vector<16x128xf32>
    %cst_24 = arith.constant dense<0.000000e+00> : vector<128xf32>
    %89 = vector.multi_reduction <add>, %88, %cst_24 [0] : vector<16x128xf32> to vector<128xf32>
    %90 = vector.shape_cast %89 : vector<128xf32> to vector<1x128xf32>
    %cst_25 = arith.constant 1.600000e+01 : f32
    %91 = vector.broadcast %cst_25 : f32 to vector<1x128xf32>
    %92 = arith.divf %90, %91 : vector<1x128xf32>
    %93 = vector.broadcast %92 : vector<1x128xf32> to vector<16x128xf32>
    %94 = arith.subf %88, %93 : vector<16x128xf32>
    %95 = arith.mulf %94, %94 : vector<16x128xf32>
    %cst_26 = arith.constant dense<0.000000e+00> : vector<128xf32>
    %96 = vector.multi_reduction <add>, %95, %cst_26 [0] : vector<16x128xf32> to vector<128xf32>
    %97 = vector.shape_cast %96 : vector<128xf32> to vector<1x128xf32>
    %cst_27 = arith.constant 0.0666666701 : f32
    %98 = vector.broadcast %cst_27 : f32 to vector<1x128xf32>
    %99 = arith.mulf %97, %98 : vector<1x128xf32>
    %100 = math.sqrt %99 : vector<1x128xf32>
    %c0_28 = arith.constant 0 : index
    %c0_29 = arith.constant 0 : index
    %101 = vector.load %arg6[%c0_28, %c0_29] : memref<16x1xf32, #tpu.memory_space<vmem>>, vector<16x1xf32>
    %102 = vector.broadcast %101 : vector<16x1xf32> to vector<16x128xf32>
    %103 = arith.mulf %102, %94 : vector<16x128xf32>
    %cst_30 = arith.constant 9.99999997E-7 : f32
    %104 = vector.broadcast %cst_30 : f32 to vector<1x128xf32>
    %105 = arith.addf %100, %104 : vector<1x128xf32>
    %106 = vector.broadcast %105 : vector<1x128xf32> to vector<16x128xf32>
    %107 = arith.divf %103, %106 : vector<16x128xf32>
    %c0_31 = arith.constant 0 : index
    %c0_32 = arith.constant 0 : index
    %108 = vector.load %arg7[%c0_31, %c0_32] : memref<16x1xf32, #tpu.memory_space<vmem>>, vector<16x1xf32>
    %109 = vector.broadcast %108 : vector<16x1xf32> to vector<16x128xf32>
    %110 = arith.addf %107, %109 : vector<16x128xf32>
    %cst_33 = arith.constant 0.000000e+00 : f32
    %111 = vector.broadcast %cst_33 : f32 to vector<16x128xf32>
    %112 = arith.maximumf %110, %111 : vector<16x128xf32>
    %c0_34 = arith.constant 0 : index
    %c0_35 = arith.constant 0 : index
    %113 = vector.load %arg8[%c0_34, %c0_35] : memref<16x128xf32, #tpu.memory_space<vmem>>, vector<16x128xf32>
    %cst_36 = arith.constant dense<0.000000e+00> : vector<128x128xf32>
    %114 = tpu.matmul %112, %113, %cst_36 {dimension_numbers = #tpu.dot_dimension_numbers<[0], [0], [1], [1], [0, 1, 1, 1], [], []>} : vector<16x128xf32>, vector<16x128xf32>, vector<128x128xf32> -> vector<128x128xf32>
    %c0_37 = arith.constant 0 : index
    %c0_38 = arith.constant 0 : index
    %115 = vector.load %arg9[%c0_37, %c0_38] : memref<1x128xf32, #tpu.memory_space<vmem>>, vector<1x128xf32>
    %116 = vector.broadcast %115 : vector<1x128xf32> to vector<128x128xf32>
    %117 = arith.addf %114, %116 : vector<128x128xf32>
    %c0_39 = arith.constant 0 : index
    %c0_40 = arith.constant 0 : index
    %118 = vector.load %arg10[%c0_39, %c0_40] : memref<128x128xf32, #tpu.memory_space<vmem>>, vector<128x128xf32>
    tpu.vector_store %arg10[%c0_39, %c0_40], %117 {strides = array<i32>} : memref<128x128xf32, #tpu.memory_space<vmem>>, vector<128x128xf32>,
    return
  }
  func.func @transform_0(%arg0: i32) -> (i32, i32) {
    %c0_i32 = arith.constant 0 : i32
    %c0_i32_0 = arith.constant 0 : i32
    return %c0_i32, %arg0 : i32, i32
  }
  func.func @transform_1(%arg0: i32) -> (i32, i32) {
    %c0_i32 = arith.constant 0 : i32
    %c0_i32_0 = arith.constant 0 : i32
    %c0_i32_1 = arith.constant 0 : i32
    return %c0_i32, %c0_i32_0 : i32, i32
  }
  func.func @transform_2(%arg0: i32) -> (i32, i32) {
    %c0_i32 = arith.constant 0 : i32
    %c0_i32_0 = arith.constant 0 : i32
    return %c0_i32, %arg0 : i32, i32
  }
  func.func @transform_3(%arg0: i32) -> (i32, i32) {
    %c0_i32 = arith.constant 0 : i32
    %c0_i32_0 = arith.constant 0 : i32
    return %c0_i32, %arg0 : i32, i32
  }
  func.func @transform_4(%arg0: i32) -> (i32, i32) {
    %c0_i32 = arith.constant 0 : i32
    %c0_i32_0 = arith.constant 0 : i32
    %c0_i32_1 = arith.constant 0 : i32
    return %c0_i32, %c0_i32_0 : i32, i32
  }
  func.func @transform_5(%arg0: i32) -> (i32, i32) {
    %c0_i32 = arith.constant 0 : i32
    %c0_i32_0 = arith.constant 0 : i32
    %c0_i32_1 = arith.constant 0 : i32
    return %c0_i32, %c0_i32_0 : i32, i32
  }
  func.func @transform_6(%arg0: i32) -> (i32, i32) {
    %c0_i32 = arith.constant 0 : i32
    %c0_i32_0 = arith.constant 0 : i32
    %c0_i32_1 = arith.constant 0 : i32
    return %c0_i32, %c0_i32_0 : i32, i32
  }
  func.func @transform_7(%arg0: i32) -> (i32, i32) {
    %c0_i32 = arith.constant 0 : i32
    %c0_i32_0 = arith.constant 0 : i32
    %c0_i32_1 = arith.constant 0 : i32
    return %c0_i32, %c0_i32_0 : i32, i32
  }
  func.func @transform_8(%arg0: i32) -> (i32, i32) {
    %c0_i32 = arith.constant 0 : i32
    %c0_i32_0 = arith.constant 0 : i32
    %c0_i32_1 = arith.constant 0 : i32
    return %c0_i32, %c0_i32_0 : i32, i32
  }
  func.func @transform_9(%arg0: i32) -> (i32, i32) {
    %c0_i32 = arith.constant 0 : i32
    %c0_i32_0 = arith.constant 0 : i32
    return %arg0, %c0_i32 : i32, i32
  }
}

</mosaic_0001>

<bundles_post_ra>
// kernel: tpu_custom_call.1
= control target key start
LH: loop header
LB: loop body
LE: loop exit
PB: predicated region body
PF: predicated region fallthrough
CT: control target
= control target key end

     0   :  { %14 = vsyncpa [#allocation5], 0  ;;  %s4751_s0 = inlined_call_operand.vmem [shape: s8[256,256], index: 0, kind: input, shape index: {}]   ;;  %s4752_s1 = inlined_call_operand.vmem [shape: bf16[32,256], index: 1, kind: input, shape index: {}]   ;;  %s4753_s2 = inlined_call_operand.vmem [shape: f32[32,256], index: 2, kind: input, shape index: {}]   ;;  %s4754_s3 = inlined_call_operand.vmem [shape: f32[2,256], index: 3, kind: input, shape index: {}]   ;;  %s4755_s4 = inlined_call_operand.vmem [shape: f32[256,2], index: 4, kind: input, shape index: {}]   ;;  %s4756_s5 = inlined_call_operand.vmem [shape: f32[16,1], index: 5, kind: input, shape index: {}]   ;;  %s4757_s6 = inlined_call_operand.vmem [shape: f32[16,1], index: 6, kind: input, shape index: {}]   ;;  %s4758_s7 = inlined_call_operand.vmem [shape: f32[16,128], index: 7, kind: input, shape index: {}]   ;;  %s4759_s8 = inlined_call_operand.vmem [shape: f32[1,128], index: 8, kind: input, shape index: {}]   ;;  %s4760_s9 = inlined_call_operand.hbm [shape: f32[256,128], index: 9, kind: output, shape index: {}]  }
   0x1   :  { %16 = vsyncpa [#allocation5 + $0x1], 0  ;;  %s3195_s30 = smov 0   ;;  %s3197_s10 = smov 0  }
   0x2   :  { %s3199_s11 = smov 0   ;;  %s3201_s12 = smov 0  }
   0x3 LB: > { %s3216_s13 = sadd.s32 4294967295, %s3138_s12   ;;  %s2685_s14 = sadd.s32 4294967294, %s3138_s12   ;;  %s3138_s12 = sphi %s3201_s12, %s4967_s12   ;;  %s3134_s11 = sphi %s3199_s11, %s4966_s11   ;;  %s3130_s10 = sphi %s3197_s10, %s4965_s10   ;;  %s3126_s30 = sphi %s3195_s30, %s4964_s30  }
   0x4   : > { %s3220_s15 = sadd.s32 1, %s3138_s12   ;;  %s29_s16 = sadd.s32 1, %s3134_s11 }
   0x5   : > { %s26_s17 = ssub.s32 %s3138_s12, %s3220_s15  ;;  %p36_p0 = scmp.ne.s32.totalorder %s3134_s11, %s3130_s10 }
   0x6   : > { %p27_p1 = scmp.eq.s32.totalorder %s26_s17, 0  ;;  %p37_p2 = scmp.eq.s32.totalorder %s3138_s12, 0 }
   0x7   : > { %p244_p3 = scmp.eq.s32.totalorder %s3216_s13, 1  ;;  %p249_p4 = scmp.ne.s32.totalorder %s3130_s10, %s3126_s30 }
   0x8   : > { %s3232_s18 = scalar_select %p27_p1, %s3134_s11, %s29_s16  }
   0x9   : > { %p3234_p5 = por %p37_p2, %p36_p0  ;;  %p3238_p6 = por %p244_p3, %p36_p0 }
   0xa   : > { %p250_p7 = scmp.eq.s32.totalorder %s2685_s14, 1  ;;  %p2687_p9 = scmp.ge.s32.totalorder %s3138_s12, 2 }
   0xc   : > { %p3242_p8 = por %p250_p7, %p249_p4  ;;  %284 = sbr.rel (%p2687_p9) target bundleno = 34 (0x22), region = 40 }
  0x13   : > { %287 = sbr.rel (!%p3234_p5) target bundleno = 27 (0x1b), region = 44  ;;  %s289_s22 = sand.u32 (%p3234_p5), 1, %s3134_s11  }
  0x14   : > { %s2689_s23 = sshll.u32 (%p3234_p5), %s3138_s12, 3  ;;  %s2688_s24 = sshll.u32 (%p3234_p5), %s289_s22, 6 }
  0x15   : > { %s293_s27 = scalar_lea.vmem (%p3234_p5), %s4751_s0, %s2689_s23  ;;  %s291_s28 = scalar_lea.vmem (%p3234_p5), [#allocation2], %s2688_s24 }
  0x16   : > { %v335_v0 = vld [vmem:[%s293_s27] sm:$0xff] (%p3234_p5)  ;;  %v337_v1 = vld [vmem:[%s293_s27 + $0x10] sm:$0xff] (%p3234_p5) }
  0x17   : > { %v339_v2 = vld [vmem:[%s293_s27 + $0x20] sm:$0xff] (%p3234_p5)  ;;  %336 = vst [vmem:[%s291_s28] sm:$0xff] (%p3234_p5), %v335_v0  ;;  %338 = vst [vmem:[%s291_s28 + $0x8] sm:$0xff] (%p3234_p5), %v337_v1  ;;  %v341_v3 = vld [vmem:[%s293_s27 + $0x30] sm:$0xff] (%p3234_p5) }
  0x18   : > { %340 = vst [vmem:[%s291_s28 + $0x10] sm:$0xff] (%p3234_p5), %v339_v2  ;;  %v343_v4 = vld [vmem:[%s293_s27 + $0x40] sm:$0xff] (%p3234_p5)  ;;  %v345_v5 = vld [vmem:[%s293_s27 + $0x50] sm:$0xff] (%p3234_p5)  ;;  %342 = vst [vmem:[%s291_s28 + $0x18] sm:$0xff] (%p3234_p5), %v341_v3 }
  0x19   : > { %344 = vst [vmem:[%s291_s28 + $0x20] sm:$0xff] (%p3234_p5), %v343_v4  ;;  %346 = vst [vmem:[%s291_s28 + $0x28] sm:$0xff] (%p3234_p5), %v345_v5  ;;  %v347_v6 = vld [vmem:[%s293_s27 + $0x60] sm:$0xff] (%p3234_p5)  ;;  %v349_v7 = vld [vmem:[%s293_s27 + $0x70] sm:$0xff] (%p3234_p5) }
  0x1a   : > { %348 = vst [vmem:[%s291_s28 + $0x30] sm:$0xff] %v347_v6  ;;  %350 = vst [vmem:[%s291_s28 + $0x38] sm:$0xff] %v349_v7 }
  0x1b PF: > { %356 = sbr.rel (!%p3234_p5) target bundleno = 34 (0x22), region = 82  ;;  %s358_s29 = sand.u32 (%p3234_p5), 1, %s3134_s11  }
  0x1c   : > { %s2691_s14 = sshll.u32 (%p3234_p5), %s3138_s12, 3  ;;  %s2690_s16 = sshll.u32 (%p3234_p5), %s358_s29, 5 }
  0x1d   : > { %s362_s23 = scalar_lea.vmem (%p3234_p5), %s4753_s2, %s2691_s14  ;;  %s360_s24 = scalar_lea.vmem (%p3234_p5), [#allocation3], %s2690_s16 }
  0x1e   : > { %v396_v8 = vld [vmem:[%s362_s23] sm:$0xff] (%p3234_p5)  ;;  %v398_v9 = vld [vmem:[%s362_s23 + $0x10] sm:$0xff] (%p3234_p5) }
  0x1f   : > { %v400_v10 = vld [vmem:[%s362_s23 + $0x20] sm:$0xff] (%p3234_p5)  ;;  %397 = vst [vmem:[%s360_s24] sm:$0xff] (%p3234_p5), %v396_v8  ;;  %399 = vst [vmem:[%s360_s24 + $0x8] sm:$0xff] (%p3234_p5), %v398_v9  ;;  %v402_v11 = vld [vmem:[%s362_s23 + $0x30] sm:$0xff] (%p3234_p5) }
  0x20   : > { %401 = vst [vmem:[%s360_s24 + $0x10] sm:$0xff] (%p3234_p5), %v400_v10  ;;  %403 = vst [vmem:[%s360_s24 + $0x18] sm:$0xff] (%p3234_p5), %v402_v11 }
  0x22 PF: > { %p2692_p10 = scmp.ge.s32.totalorder %s3138_s12, 1  ;;  %p415_p11 = scmp.lt.s32.totalorder %s3138_s12, 3 }
  0x24   : > { %p416_p12 = pnand %p2692_p10, %p415_p11 }
  0x26   : > { %419 = sbr.rel (%p416_p12) target bundleno = 1401 (0x579), region = 124 }
  0x2d   : > { %v3268_v12 = vld [vmem:[%s4755_s4 + $0x10] sm:$0xff]  ;;  %v3273_v13 = vld [vmem:[%s4755_s4] sm:$0xff]  ;;  %v3278_v14 = vld [vmem:[%s4755_s4 + $0x18] sm:$0xff]  ;;  %v4761_v15 = vmov 0   ;;  %p472_p13 = scmp.lt.s32.totalorder %s3216_s13, 1  ;;  %s3753_s22 = sand.u32 1, %s3130_s10  }
  0x2e   : > { %2865 = vset.pattern.permute.xlu1 %v4761_v15  ;;  %2864 = vset.pattern.permute.xlu0 %v4761_v15  ;;  %v595_v16 = vmul.f32 1.442695, %v3268_v12  ;;  %v591_v17 = vmul.f32 1.442695, %v3273_v13  ;;  %v3287_v18 = vld [vmem:[%s4755_s4 + $0x8] sm:$0xff]  ;;  %v3299_v22 = vld [vmem:[%s4755_s4 + $0x20] sm:$0xff] }
  0x2f   : > { %v3292_v19 = vld [vmem:[%s4755_s4 + $0x28] sm:$0xff]  ;;  %v597_v20 = vmul.f32 1.442695, %v3278_v14  ;;  %v593_v21 = vmul.f32 1.442695, %v3287_v18  ;;  %v3306_v25 = vld [vmem:[%s4755_s4 + $0x38] sm:$0xff] }
  0x30   : > { %2922 = vpow2.f32 %v595_v16  ;;  %v601_v23 = vmul.f32 1.442695, %v3292_v19  ;;  %v599_v24 = vmul.f32 1.442695, %v3299_v22  ;;  %v3311_v26 = vld [vmem:[%s4755_s4 + $0x30] sm:$0xff]  ;;  %v3318_v29 = vld [vmem:[%s4755_s4 + $0x48] sm:$0xff] }
  0x31   : > { %2924 = vpow2.f32 %v591_v17  ;;  %v605_v27 = vmul.f32 1.442695, %v3306_v25  ;;  %v603_v28 = vmul.f32 1.442695, %v3311_v26  ;;  %v3323_v30 = vld [vmem:[%s4755_s4 + $0x40] sm:$0xff]  ;;  %v3335_v35 = vld [vmem:[%s4755_s4 + $0x58] sm:$0xff] }
  0x32   : > { %2926 = vpow2.f32 %v597_v20  ;;  %v609_v32 = vmul.f32 1.442695, %v3318_v29  ;;  %v607_v34 = vmul.f32 1.442695, %v3323_v30  ;;  %v3341_v36 = vld [vmem:[%s4755_s4 + $0x50] sm:$0xff]  ;;  %v3353_v41 = vld [vmem:[%s4755_s4 + $0x68] sm:$0xff] }
  0x33   : > { %2928 = vpow2.f32 %v593_v21  ;;  %v613_v38 = vmul.f32 1.442695, %v3335_v35  ;;  %v611_v40 = vmul.f32 1.442695, %v3341_v36  ;;  %v3361_v43 = vld [vmem:[%s4755_s4 + $0x60] sm:$0xff]  ;;  %v3371_v47 = vld [vmem:[%s4755_s4 + $0x78] sm:$0xff] }
  0x34   : > { %2930 = vpow2.f32 %v601_v23  ;;  %v617_v45 = vmul.f32 1.442695, %v3353_v41  ;;  %v615_v46 = vmul.f32 1.442695, %v3361_v43  ;;  %v3379_v49 = vld [vmem:[%s4755_s4 + $0x70] sm:$0xff]  ;;  %v3389_v53 = vld [vmem:[%s4755_s4 + $0x88] sm:$0xff] }
  0x35   : > { %2932 = vpow2.f32 %v599_v24  ;;  %v621_v51 = vmul.f32 1.442695, %v3371_v47  ;;  %v619_v52 = vmul.f32 1.442695, %v3379_v49  ;;  %v3397_v55 = vld [vmem:[%s4755_s4 + $0x80] sm:$0xff]  ;;  %v3407_v59 = vld [vmem:[%s4755_s4 + $0x98] sm:$0xff] }
  0x36   : > { %2934 = vpow2.f32 %v605_v27  ;;  %v625_v57 = vmul.f32 1.442695, %v3389_v53  ;;  %v623_v58 = vmul.f32 1.442695, %v3397_v55  ;;  %v3415_v61 = vld [vmem:[%s4755_s4 + $0x90] sm:$0xff]  ;;  %v3425_v1 = vld [vmem:[%s4755_s4 + $0xa8] sm:$0xff] }
  0x37   : > { %2936 = vpow2.f32 %v603_v28  ;;  %v629_v63 = vmul.f32 1.442695, %v3407_v59  ;;  %v627_v0 = vmul.f32 1.442695, %v3415_v61  ;;  %v3433_v3 = vld [vmem:[%s4755_s4 + $0xa0] sm:$0xff]  ;;  %v3443_v7 = vld [vmem:[%s4755_s4 + $0xb8] sm:$0xff] }
  0x38   : > { %2938 = vpow2.f32 %v609_v32  ;;  %v633_v5 = vmul.f32 1.442695, %v3425_v1  ;;  %v631_v6 = vmul.f32 1.442695, %v3433_v3  ;;  %v3451_v9 = vld [vmem:[%s4755_s4 + $0xb0] sm:$0xff]  ;;  %v3461_v17 = vld [vmem:[%s4755_s4 + $0xc8] sm:$0xff] }
  0x39   : > { %2940 = vpow2.f32 %v607_v34  ;;  %v637_v11 = vmul.f32 1.442695, %v3443_v7  ;;  %v635_v16 = vmul.f32 1.442695, %v3451_v9  ;;  %v3469_v21 = vld [vmem:[%s4755_s4 + $0xc0] sm:$0xff]  ;;  %v3479_v28 = vld [vmem:[%s4755_s4 + $0xd8] sm:$0xff] }
  0x3a   : > { %v3325_v31 = vpop.eup %2922  ;;  %2942 = vpow2.f32 %v613_v38  ;;  %v641_v24 = vmul.f32 1.442695, %v3461_v17  ;;  %v639_v27 = vmul.f32 1.442695, %v3469_v21  ;;  %v3487_v34 = vld [vmem:[%s4755_s4 + $0xd0] sm:$0xff]  ;;  %s473_s19 = scalar_select %p472_p13, %s3216_s13, 1 }
  0x3b   : > { %v3328_v33 = vpop.eup %2924  ;;  %669 = vperm.xlu1 %2865, %v3325_v31   ;;  %2944 = vpow2.f32 %v611_v40  ;;  %v645_v40 = vmul.f32 1.442695, %v3479_v28  ;;  %s2693_s23 = sshll.u32 %s3753_s22, 6  ;;  %s2694_s27 = sshll.u32 %s3753_s22, 5 }
  0x3c   : > { %659 = vperm.xlu0 %2864, %v3328_v33   ;;  %v3343_v37 = vpop.eup %2926  ;;  %2946 = vpow2.f32 %v617_v45  ;;  %v643_v45 = vmul.f32 1.442695, %v3487_v34  ;;  %s2696_s25 = sshll.u32 %s473_s19, 1  ;;  %s3776_s24 = scalar_lea.vmem [#allocation2], %s2693_s23 }
  0x3d   : > { %v3346_v39 = vpop.eup %2928  ;;  %2948 = vpow2.f32 %v615_v46  ;;  %v3497_v46 = vld [vmem:[%s4755_s4 + $0xe8] sm:$0xff]  ;;  %s475_s28 = scalar_lea.vmem %s4754_s3, %s2696_s25  ;;  %s2695_s23 = sshll.u32 %s3753_s22, 7 }
  0x3e   : > { %v3355_v42 = vpop.eup %2930  ;;  %2950 = vpow2.f32 %v621_v51  ;;  %s4682_s25 = scalar_lea.vmem [#allocation4], %s2695_s23  ;;  %s2723_s26 = sshll.u32 %s3216_s13, 11 }
  0x3f   : > { %674 = vperm.xlu1 %2865, %v3343_v37   ;;  %v3363_v44 = vpop.eup %2932  ;;  %2952 = vpow2.f32 %v619_v52  ;;  %v3505_v52 = vld [vmem:[%s4755_s4 + $0xe0] sm:$0xff]  ;;  %s4703_s14 = scalar_lea.hbm %s4760_s9, %s2723_s26  ;;  %s2574_s16 = scalar_lea.sflag [#allocation5], %s3753_s22 }
  0x40   : > { %664 = vperm.xlu0 %2864, %v3346_v39   ;;  %v3373_v48 = vpop.eup %2934  ;;  %2954 = vpow2.f32 %v625_v57  ;;  %s3142_s13 = smov [#allocation4]  }
  0x41   : > { %4808 = vst [vmem:[#allocation7_spill] sm:$0xff] %v3373_v48  ;;  %v3381_v50 = vpop.eup %2936  ;;  %2956 = vpow2.f32 %v623_v58  ;;  %v649_v58 = vmul.f32 1.442695, %v3497_v46  ;;  %s3080_s23 = sshll.u32 %s3142_s13, 4  ;;  %s3081_s23 = int_to_ptr.vmem [resolvable:$false] %s3080_s23 }
  0x42   : > { %v3391_v54 = vpop.eup %2938  ;;  %2958 = vpow2.f32 %v629_v63  ;;  %v647_v63 = vmul.f32 1.442695, %v3505_v52 }
  0x43   : > { %684 = vperm.xlu1 %2865, %v3355_v42   ;;  %4809 = vst [vmem:[#allocation8_spill] sm:$0xff] %v3391_v54  ;;  %v3399_v56 = vpop.eup %2940  ;;  %2960 = vpow2.f32 %v627_v0 }
  0x44   : > { %679 = vperm.xlu0 %2864, %v3363_v44   ;;  %4810 = vst [vmem:[#allocation9_spill] sm:$0xff] %v3399_v56  ;;  %v3409_v60 = vpop.eup %2942  ;;  %2962 = vpow2.f32 %v633_v5 }
  0x45   : > { %4811 = vst [vmem:[#allocation10_spill] sm:$0xff] %v3409_v60  ;;  %v3417_v62 = vpop.eup %2944  ;;  %2964 = vpow2.f32 %v631_v6  ;;  %v870_v6 = vmul.f32 0.2, %v3389_v53 }
  0x46   : > { %4812 = vst [vmem:[#allocation11_spill] sm:$0xff] %v3417_v62  ;;  %v3427_v2 = vpop.eup %2946  ;;  %2966 = vpow2.f32 %v637_v11 }
  0x47   : > { %694 = vperm.xlu1 %2865, %v3373_v48   ;;  %4813 = vst [vmem:[#allocation12_spill] sm:$0xff] %v3427_v2  ;;  %v3435_v4 = vpop.eup %2948  ;;  %2968 = vpow2.f32 %v635_v16 }
  0x48   : > { %689 = vperm.xlu0 %2864, %v3381_v50   ;;  %4814 = vst [vmem:[#allocation13_spill] sm:$0xff] %v3435_v4  ;;  %v3445_v8 = vpop.eup %2950  ;;  %2970 = vpow2.f32 %v641_v24  ;;  %v919_v24 = vmul.f32 1.442695, %v870_v6 }
  0x49   : > { %4815 = vst [vmem:[#allocation14_spill] sm:$0xff] %v3445_v8  ;;  %v3453_v10 = vpop.eup %2952  ;;  %2972 = vpow2.f32 %v639_v27  ;;  %v854_v27 = vmul.f32 0.2, %v3287_v18 }
  0x4a   : > { %4816 = vst [vmem:[#allocation15_spill] sm:$0xff] %v3453_v10  ;;  %v3463_v20 = vpop.eup %2954  ;;  %2974 = vpow2.f32 %v645_v40 }
  0x4b   : > { %704 = vperm.xlu1 %2865, %v3391_v54   ;;  %v3471_v23 = vpop.eup %2956  ;;  %2976 = vpow2.f32 %v643_v45  ;;  %v869_v45 = vmul.f32 0.2, %v3397_v55 }
  0x4c   : > { %699 = vperm.xlu0 %2864, %v3399_v56   ;;  %v3481_v32 = vpop.eup %2958  ;;  %2978 = vpow2.f32 %v649_v58  ;;  %v4823_v56 = vmov 0  }
  0x4d   : > { %v3489_v38 = vpop.eup %2960  ;;  %2980 = vpow2.f32 %v647_v63  ;;  %v887_v63 = vmul.f32 1.442695, %v854_v27  ;;  %v917_v6 = vmul.f32 1.442695, %v869_v45 }
  0x4e   : > { %v3499_v51 = vpop.eup %2962  ;;  %2982 = vpow2.f32 %v919_v24 }
  0x4f   : > { %714 = vperm.xlu1 %2865, %v3409_v60   ;;  %v3507_v57 = vpop.eup %2964  ;;  %2984 = vpow2.f32 %v887_v63 }
  0x50   : > { %709 = vperm.xlu0 %2864, %v3417_v62   ;;  %v3512_v0 = vpop.eup %2966  ;;  %2986 = vpow2.f32 %v917_v6 }
  0x51   : > { %v3515_v5 = vpop.eup %2968 }
  0x52   : > { %v3519_v11 = vpop.eup %2970 }
  0x53   : > { %724 = vperm.xlu1 %2865, %v3427_v2   ;;  %4817 = vst [vmem:[#allocation16_spill] sm:$0xff] %v3519_v11  ;;  %v3522_v16 = vpop.eup %2972  ;;  %v817_v2 = vlaneseq }
  0x54   : > { %719 = vperm.xlu0 %2864, %v3435_v4   ;;  %v3526_v40 = vpop.eup %2974  ;;  %v3553_v4 = vld [vmem:[%s475_s28] sm:$0x3]  ;;  %s431_s28 = scalar_lea.vmem [#allocation3], %s2694_s27  ;;  %s2587_s27 = sshll.u32 %s4682_s25, 4  ;;  %s4705_s27 = int_to_ptr.vmem [resolvable:$true] %s2587_s27 }
  0x55   : > { %4818 = vst [vmem:[#allocation17_spill] sm:$0xff] %v3526_v40  ;;  %v3531_v58 = vpop.eup %2976  ;;  %v3544_v27 = vshrl.u32 %v817_v2, 7  ;;  %v655_v62 = vmul.f32 1.442695, %v3553_v4  ;;  %s3076_s17 = scalar_lea.vmem %s4705_s27, 2048  ;;  %p3083_p3 = scmp.lt.s32.totalorder %s4705_s27, %s3081_s23 }
  0x56   : > { %4819 = vst [vmem:[#allocation18_spill] sm:$0xff] %v3531_v58  ;;  %v3534_v15 = vpop.eup %2978  ;;  %p3077_p0 = scmp.ne.s32.totalorder %s4705_s27, %s3076_s17 }
  0x57   : > { %734 = vperm.xlu1 %2865, %v3445_v8   ;;  %4820 = vst [vmem:[#allocation19_spill] sm:$0xff] %v3534_v15  ;;  %v3538_v8 = vpop.eup %2980  ;;  %v1685_v63 = vsub.s32 1, %v3544_v27 }
  0x58   : > { %729 = vperm.xlu0 %2864, %v3453_v10   ;;  %4821 = vst [vmem:[#allocation20_spill] sm:$0xff] %v3538_v8  ;;  %v871_v10 = vmul.f32 0.2, %v3415_v61  ;;  %v3550_v45 = vpop.eup %2982  ;;  %p3078_p1 = pnand %p3077_p0, %p3238_p6 }
  0x59   : > { %v3558_v2 = vrot.slane %v3553_v4, %v1685_v63  ;;  %v2985_v6 = vpop.eup %2984 }
  0x5a   : > { %v921_v24 = vmul.f32 1.442695, %v871_v10  ;;  %v856_v10 = vmul.f32 0.2, %v3278_v14  ;;  %v2987_v60 = vpop.eup %2986  ;;  %p3079_p2 = pneg %p3078_p1 }
  0x5b   : > { %744 = vperm.xlu1 %2865, %v3463_v20   ;;  %4822 = vst [vmem:[#allocation21_spill] sm:$0xff] %v3558_v2 }
  0x5c   : > { %739 = vperm.xlu0 %2864, %v3471_v23   ;;  %2988 = vpow2.f32 %v921_v24  ;;  %v891_v54 = vmul.f32 1.442695, %v856_v10 }
  0x5d   : > { %2990 = vpow2.f32 %v655_v62 }
  0x5e   : > { %2992 = vpow2.f32 %v891_v54  ;;  %v858_v54 = vmul.f32 0.2, %v3292_v19 }
  0x5f   : > { %754 = vperm.xlu1 %2865, %v3481_v32  }
  0x60   : > { %749 = vperm.xlu0 %2864, %v3489_v38  }
  0x63   : > { %764 = vperm.xlu1 %2865, %v3499_v51  }
  0x64   : > { %759 = vperm.xlu0 %2864, %v3507_v57  }
  0x66   : > { %v3567_v2 = vpop.eup %2988 }
  0x67   : > { %774 = vperm.xlu1 %2865, %v3512_v0   ;;  %v3574_v62 = vpop.eup %2990 }
  0x68   : > { %769 = vperm.xlu0 %2864, %v3515_v5  }
  0x6b   : > { %784 = vperm.xlu1 %2865, %v3519_v11  }
  0x6c   : > { %779 = vperm.xlu0 %2864, %v3522_v16  }
  0x6f   : > { %794 = vperm.xlu1 %2865, %v3526_v40   ;;  %v949_v40 = vmul.f32 0.2, %v3553_v4 }
  0x70   : > { %789 = vperm.xlu0 %2864, %v3531_v58   ;;  %v3581_v58 = vrot.slane %v3574_v62, %v1685_v63 }
  0x71   : > { %v950_v24 = vmul.f32 1.442695, %v949_v40  ;;  %v3577_v40 = vpop.eup %2992 }
  0x72   : > { %4825 = vst [vmem:[#allocation22_spill] sm:$0xff] %v3581_v58 }
  0x73   : > { %804 = vperm.xlu1 %2865, %v3534_v15   ;;  %v4773_v15 = vmov 1   ;;  %2994 = vpow2.f32 %v950_v24 }
  0x74   : > { %799 = vperm.xlu0 %2864, %v3538_v8   ;;  %v4824_v8 = vmov 1  }
  0x77   : > { %1235 = vperm.xlu1 %2865, %v3389_v53  }
  0x78   : > { %1230 = vperm.xlu0 %2864, %v3397_v55  }
  0x7b   : > { %2866 = vset.pattern.permute.xlu1 %v4773_v15  ;;  %v873_v15 = vmul.f32 0.2, %v3433_v3 }
  0x7c   : > { %1039 = vperm.xlu0 %2864, %v3550_v45   ;;  %1952 = vperm.xlu1 %2866, %v3389_v53   ;;  %v853_v53 = vmul.f32 0.2, %v3273_v13 }
  0x7d   : > { %v925_v11 = vmul.f32 1.442695, %v873_v15  ;;  %v895_v15 = vmul.f32 1.442695, %v858_v54  ;;  %v3584_v24 = vpop.eup %2994 }
  0x7e   : > { %v885_v10 = vmul.f32 1.442695, %v853_v53  ;;  %v875_v53 = vmul.f32 0.2, %v3451_v9 }
  0x7f   : > { %2996 = vpow2.f32 %v925_v11  ;;  %v3588_v11 = vrot.slane %v3584_v24, %v1685_v63 }
  0x80   : > { %959 = vperm.xlu0 %2864, %v2985_v6   ;;  %2867 = vset.pattern.permute.xlu1 %v4823_v56  ;;  %2998 = vpow2.f32 %v885_v10  ;;  %v929_v10 = vmul.f32 1.442695, %v875_v53  ;;  %v872_v53 = vmul.f32 0.2, %v3407_v59 }
  0x81   : > { %1034 = vperm.xlu1 %2867, %v2987_v60   ;;  %4826 = vst [vmem:[#allocation23_spill] sm:$0xff] %v3588_v11  ;;  %3000 = vpow2.f32 %v895_v15  ;;  %v862_v11 = vmul.f32 0.2, %v3318_v29 }
  0x82   : > { %3002 = vpow2.f32 %v929_v10 }
  0x84   : > { %1245 = vperm.xlu0 %2864, %v3407_v59  }
  0x85   : > { %1150 = vperm.xlu1 %2867, %v3273_v13  }
  0x88   : > { %1044 = vperm.xlu0 %2864, %v3567_v2  }
  0x89   : > { %1155 = vperm.xlu1 %2867, %v3287_v18   ;;  %v3592_v48 = vpop.eup %2996 }
  0x8c   : > { %1160 = vperm.xlu0 %2864, %v3268_v12  }
  0x8d   : > { %2868 = vset.pattern.permute.xlu1 %v4824_v8 }
  0x8e   : > { %1624 = vperm.xlu1 %2868, %v3463_v20   ;;  %v3595_v20 = vpop.eup %2998 }
  0x8f   : > { %v3602_v63 = vpop.eup %3000 }
  0x90   : > { %969 = vperm.xlu0 %2864, %v3577_v40   ;;  %v3610_v15 = vpop.eup %3002 }
  0x92   : > { %1784 = vperm.xlu1 %2868, %v2987_v60   ;;  %v860_v60 = vmul.f32 0.2, %v3306_v25 }
  0x94   : > { %1255 = vperm.xlu0 %2864, %v3425_v1   ;;  %v899_v54 = vmul.f32 1.442695, %v860_v60  ;;  %v923_v60 = vmul.f32 1.442695, %v872_v53 }
  0x96   : > { %1884 = vperm.xlu1 %2868, %v3273_v13   ;;  %3004 = vpow2.f32 %v899_v54  ;;  %v877_v13 = vmul.f32 0.2, %v3469_v21 }
  0x98   : > { %1054 = vperm.xlu0 %2864, %v3592_v48   ;;  %v933_v10 = vmul.f32 1.442695, %v877_v13 }
  0x9a   : > { %2869 = vset.pattern.permute.xlu1 %v4823_v56  ;;  %3006 = vpow2.f32 %v933_v10 }
  0x9b   : > { %954 = vperm.xlu1 %2869, %v3595_v20   ;;  %3008 = vpow2.f32 %v923_v60 }
  0x9c   : > { %1170 = vperm.xlu0 %2864, %v3299_v22  }
  0x9f   : > { %2870 = vset.pattern.permute.xlu1 %v4824_v8 }
  0xa0   : > { %979 = vperm.xlu0 %2864, %v3602_v63   ;;  %1556 = vperm.xlu1 %2870, %v3328_v33   ;;  %v3617_v33 = vpop.eup %3004 }
  0xa4   : > { %1265 = vperm.xlu0 %2864, %v3443_v7   ;;  %1560 = vperm.xlu1 %2870, %v3346_v39   ;;  %v903_v39 = vmul.f32 1.442695, %v862_v11  ;;  %v3625_v29 = vpop.eup %3006 }
  0xa5   : > { %4827 = vst [vmem:[#allocation24_spill] sm:$0xff] %v3625_v29  ;;  %v3628_v13 = vpop.eup %3008 }
  0xa6   : > { %3010 = vpow2.f32 %v903_v39 }
  0xa8   : > { %1064 = vperm.xlu0 %2864, %v3610_v15   ;;  %1724 = vperm.xlu1 %2870, %v2985_v6   ;;  %v879_v6 = vmul.f32 0.2, %v3487_v34  ;;  %v855_v34 = vmul.f32 0.2, %v3268_v12 }
  0xaa   : > { %v937_v54 = vmul.f32 1.442695, %v879_v6  ;;  %v889_v6 = vmul.f32 1.442695, %v855_v34 }
  0xac   : > { %1180 = vperm.xlu0 %2864, %v3311_v26   ;;  %2871 = vset.pattern.permute.xlu1 %v4823_v56  ;;  %3012 = vpow2.f32 %v937_v54 }
  0xad   : > { %1240 = vperm.xlu1 %2871, %v3415_v61  }
  0xb0   : > { %989 = vperm.xlu0 %2864, %v3617_v33  }
  0xb1   : > { %2872 = vset.pattern.permute.xlu1 %v4824_v8 }
  0xb2   : > { %1956 = vperm.xlu1 %2872, %v3415_v61   ;;  %v864_v61 = vmul.f32 0.2, %v3335_v35  ;;  %v881_v35 = vmul.f32 0.2, %v3505_v52  ;;  %v866_v52 = vmul.f32 0.2, %v3353_v41 }
  0xb4   : > { %1275 = vperm.xlu0 %2864, %v3461_v17   ;;  %v907_v39 = vmul.f32 1.442695, %v864_v61 }
  0xb6   : > { %1960 = vperm.xlu1 %2872, %v3407_v59   ;;  %v3640_v59 = vpop.eup %3010  ;;  %3014 = vpow2.f32 %v907_v39 }
  0xb7   : > { %4828 = vst [vmem:[#allocation25_spill] sm:$0xff] %v3640_v59  ;;  %3016 = vpow2.f32 %v889_v6 }
  0xb8   : > { %1074 = vperm.xlu0 %2864, %v3625_v29   ;;  %v3656_v29 = vpop.eup %3012 }
  0xb9   : > { %4831 = vst [vmem:[#allocation28_spill] sm:$0xff] %v3656_v29 }
  0xba   : > { %v3631_v11 = vpop.permute.xlu1 %669  ;;  %2873 = vset.pattern.permute.xlu1 %v4823_v56 }
  0xbb   : > { %v3634_v53 = vpop.permute.xlu0 %659  ;;  %1049 = vperm.xlu1 %2873, %v3628_v13  }
  0xbc   : > { %1190 = vperm.xlu0 %2864, %v3323_v30  }
  0xbe   : > { %v3642_v10 = vpop.permute.xlu1 %674 }
  0xbf   : > { %v3644_v60 = vpop.permute.xlu0 %664  ;;  %1165 = vperm.xlu1 %2873, %v3278_v14  }
  0xc0   : > { %999 = vperm.xlu0 %2864, %v3640_v59   ;;  %v941_v59 = vmul.f32 1.442695, %v881_v35 }
  0xc2   : > { %v3648_v58 = vpop.permute.xlu1 %684  ;;  %3018 = vpow2.f32 %v941_v59 }
  0xc3   : > { %4829 = vst [vmem:[#allocation26_spill] sm:$0xff] %v3648_v58  ;;  %v3650_v54 = vpop.permute.xlu0 %679  ;;  %2874 = vset.pattern.permute.xlu1 %v4824_v8 }
  0xc4   : > { %4830 = vst [vmem:[#allocation27_spill] sm:$0xff] %v3650_v54  ;;  %1285 = vperm.xlu0 %2864, %v3479_v28   ;;  %1632 = vperm.xlu1 %2874, %v3481_v32   ;;  %v3671_v32 = vpop.eup %3014 }
  0xc5   : > { %4836 = vst [vmem:[#allocation33_spill] sm:$0xff] %v3671_v32  ;;  %v3673_v6 = vpop.eup %3016 }
  0xc6   : > { %v3658_v61 = vpop.permute.xlu1 %694 }
  0xc7   : > { %4832 = vst [vmem:[#allocation29_spill] sm:$0xff] %v3658_v61  ;;  %v3660_v34 = vpop.permute.xlu0 %689 }
  0xc8   : > { %4833 = vst [vmem:[#allocation30_spill] sm:$0xff] %v3660_v34  ;;  %1084 = vperm.xlu0 %2864, %v3656_v29   ;;  %1792 = vperm.xlu1 %2874, %v3567_v2   ;;  %v911_v2 = vmul.f32 1.442695, %v866_v52 }
  0xca   : > { %v3664_v54 = vpop.permute.xlu1 %704  ;;  %3020 = vpow2.f32 %v911_v2 }
  0xcb   : > { %4834 = vst [vmem:[#allocation31_spill] sm:$0xff] %v3664_v54  ;;  %v3666_v39 = vpop.permute.xlu0 %699 }
  0xcc   : > { %4835 = vst [vmem:[#allocation32_spill] sm:$0xff] %v3666_v39  ;;  %1200 = vperm.xlu0 %2864, %v3341_v36   ;;  %1892 = vperm.xlu1 %2874, %v3268_v12   ;;  %v589_v12 = vld [vmem:[%s4755_s4 + $0xf0] sm:$0xff] }
  0xcd   : > { %v883_v39 = vmul.f32 0.2, %v589_v12 }
  0xce   : > { %v3675_v35 = vpop.permute.xlu1 %714 }
  0xcf   : > { %4837 = vst [vmem:[#allocation34_spill] sm:$0xff] %v3675_v35  ;;  %v3677_v34 = vpop.permute.xlu0 %709  ;;  %v3690_v35 = vpop.eup %3018  ;;  %v945_v54 = vmul.f32 1.442695, %v883_v39 }
  0xd0   : > { %4838 = vst [vmem:[#allocation35_spill] sm:$0xff] %v3677_v34  ;;  %1009 = vperm.xlu0 %2864, %v3671_v32   ;;  %2875 = vset.pattern.permute.xlu1 %v4823_v56  ;;  %4841 = vst [vmem:[#allocation38_spill] sm:$0xff] %v3690_v35 }
  0xd1   : > { %964 = vperm.xlu1 %2875, %v3673_v6  }
  0xd2   : > { %v3682_v41 = vpop.permute.xlu1 %724 }
  0xd3   : > { %4839 = vst [vmem:[#allocation36_spill] sm:$0xff] %v3682_v41  ;;  %v3684_v59 = vpop.permute.xlu0 %719  ;;  %v651_v41 = vmul.f32 1.442695, %v589_v12 }
  0xd4   : > { %4840 = vst [vmem:[#allocation37_spill] sm:$0xff] %v3684_v59  ;;  %1295 = vperm.xlu0 %2864, %v3497_v46   ;;  %v3706_v61 = vpop.eup %3020 }
  0xd5   : > { %2876 = vset.pattern.permute.xlu1 %v4824_v8  ;;  %3022 = vpow2.f32 %v651_v41  ;;  %4844 = vst [vmem:[#allocation41_spill] sm:$0xff] %v3706_v61 }
  0xd6   : > { %v3693_v52 = vpop.permute.xlu1 %734  ;;  %1564 = vperm.xlu1 %2876, %v3325_v31   ;;  %3024 = vpow2.f32 %v945_v54 }
  0xd7   : > { %4842 = vst [vmem:[#allocation39_spill] sm:$0xff] %v3693_v52  ;;  %v3696_v34 = vpop.permute.xlu0 %729  ;;  %v874_v52 = vmul.f32 0.2, %v3425_v1 }
  0xd8   : > { %4843 = vst [vmem:[#allocation40_spill] sm:$0xff] %v3696_v34  ;;  %1094 = vperm.xlu0 %2864, %v3690_v35   ;;  %v868_v34 = vmul.f32 0.2, %v3371_v47 }
  0xda   : > { %v3699_v2 = vpop.permute.xlu1 %744  ;;  %1568 = vperm.xlu1 %2876, %v3343_v37   ;;  %v927_v37 = vmul.f32 1.442695, %v874_v52 }
  0xdb   : > { %v3702_v59 = vpop.permute.xlu0 %739 }
  0xdc   : > { %1210 = vperm.xlu0 %2864, %v3361_v43   ;;  %v3718_v43 = vld [vmem:[%s4755_s4 + $0xf8] sm:$0xff]  ;;  %3026 = vpow2.f32 %v927_v37 }
  0xde   : > { %v3708_v31 = vpop.permute.xlu1 %754  ;;  %1732 = vperm.xlu1 %2876, %v3577_v40   ;;  %v915_v40 = vmul.f32 1.442695, %v868_v34 }
  0xdf   : > { %v3711_v12 = vpop.permute.xlu0 %749  ;;  %v3727_v47 = vpop.eup %3022 }
  0xe0   : > { %1019 = vperm.xlu0 %2864, %v3706_v61   ;;  %3028 = vpow2.f32 %v915_v40  ;;  %v3736_v61 = vpop.eup %3024 }
  0xe1   : > { %4847 = vst [vmem:[#allocation44_spill] sm:$0xff] %v3736_v61 }
  0xe2   : > { %v3720_v39 = vpop.permute.xlu1 %764  ;;  %2877 = vset.pattern.permute.xlu1 %v4823_v56 }
  0xe3   : > { %v3723_v41 = vpop.permute.xlu0 %759  ;;  %1250 = vperm.xlu1 %2877, %v3433_v3  }
  0xe4   : > { %1305 = vperm.xlu0 %2864, %v3718_v43  }
  0xe6   : > { %v3729_v54 = vpop.permute.xlu1 %774  ;;  %v3744_v37 = vpop.eup %3026 }
  0xe7   : > { %4845 = vst [vmem:[#allocation42_spill] sm:$0xff] %v3729_v54  ;;  %v3731_v52 = vpop.permute.xlu0 %769  ;;  %2878 = vset.pattern.permute.xlu1 %v4824_v8 }
  0xe8   : > { %4846 = vst [vmem:[#allocation43_spill] sm:$0xff] %v3731_v52  ;;  %809 = vperm.xlu0 %2864, %v3727_v47   ;;  %1964 = vperm.xlu1 %2878, %v3433_v3  }
  0xea   : > { %v3738_v34 = vpop.permute.xlu1 %784  ;;  %v3755_v3 = vpop.eup %3028 }
  0xeb   : > { %4848 = vst [vmem:[#allocation45_spill] sm:$0xff] %v3738_v34  ;;  %v3740_v35 = vpop.permute.xlu0 %779  ;;  %4852 = vst [vmem:[#allocation49_spill] sm:$0xff] %v3755_v3 }
  0xec   : > { %4849 = vst [vmem:[#allocation46_spill] sm:$0xff] %v3740_v35  ;;  %1104 = vperm.xlu0 %2864, %v3736_v61   ;;  %1968 = vperm.xlu1 %2878, %v3425_v1   ;;  %v857_v1 = vmul.f32 0.2, %v3299_v22 }
  0xee   : > { %v3746_v32 = vpop.permute.xlu1 %794 }
  0xef   : > { %4850 = vst [vmem:[#allocation47_spill] sm:$0xff] %v3746_v32  ;;  %v3748_v52 = vpop.permute.xlu0 %789 }
  0xf0   : > { %4851 = vst [vmem:[#allocation48_spill] sm:$0xff] %v3748_v52  ;;  %1220 = vperm.xlu0 %2864, %v3379_v49   ;;  %2879 = vset.pattern.permute.xlu1 %v4823_v56  ;;  %v819_v49 = vsub.s32 0, %v3544_v27  ;;  %v893_v52 = vmul.f32 1.442695, %v857_v1 }
  0xf1   : > { %1059 = vperm.xlu1 %2879, %v3744_v37  }
  0xf2   : > { %v3758_v40 = vpop.permute.xlu1 %804  ;;  %v3768_v35 = vrot.slane %v3553_v4, %v819_v49  ;;  %3030 = vpow2.f32 %v893_v52  ;;  %v3789_v54 = vrot.slane %v3574_v62, %v819_v49 }
  0xf3   : > { %4853 = vst [vmem:[#allocation50_spill] sm:$0xff] %v3758_v40  ;;  %v3761_v61 = vpop.permute.xlu0 %799  ;;  %v3774_v40 = vrot.slane %v3584_v24, %v819_v49 }
  0xf4   : > { %4854 = vst [vmem:[#allocation51_spill] sm:$0xff] %v3761_v61  ;;  %1029 = vperm.xlu0 %2864, %v3755_v3   ;;  %v3779_v61 = vld [vmem:[%s3776_s24 + $0x20] sm:$0xff] }
  0xf5   : > { %1175 = vperm.xlu1 %2879, %v3292_v19   ;;  %v502_v3 = vunpack.c.0.s8 %v3779_v61  ;;  %v503_v24 = vunpack.c.1.s8 %v3779_v61 }
  0xf6   : > { %v1236_v32 = vpop.permute.xlu1 %1235 }
  0xf7   : > { %v1231_v34 = vpop.permute.xlu0 %1230  ;;  %v1329_v1 = vadd.f32 %v3768_v35, %v1236_v32  ;;  %v837_v32 = vmul.f32 %v3789_v54, %v3702_v59  ;;  %v3798_v58 = vcvt.s32.f32 %v502_v3  ;;  %v3800_v62 = vcvt.s32.f32 %v503_v24 }
  0xf8   : > { %2912 = vset.pattern.permute.xlu0 %v4824_v8 }
  0xf9   : > { %1948 = vperm.xlu0 %2912, %v3397_v55   ;;  %2880 = vset.pattern.permute.xlu1 %v4824_v8  ;;  %v1328_v55 = vadd.f32 %v3768_v35, %v1231_v34  ;;  %vm1361_vm0 = vcmp.gt.f32.partialorder %v1329_v1, 0.0 }
  0xfa   : > { %1640 = vperm.xlu1 %2880, %v3499_v51   ;;  %v838_v51 = vmul.f32 %v3789_v54, %v3699_v2 }
  0xfb   : > { %v1040_v27 = vpop.permute.xlu0 %1039  ;;  %v3782_v4 = vpop.permute.xlu1 %1952  ;;  %vm1360_vm1 = vcmp.gt.f32.partialorder %v1328_v55, 0.0 }
  0xfc   : > { %v1133_v29 = vmul.f32 %v3774_v40, %v1040_v27  ;;  %v3807_v27 = vpop.eup %3030 }
  0xfd   : > { %1620 = vperm.xlu0 %2912, %v3471_v23  }
  0xfe   : > { %1800 = vperm.xlu1 %2880, %v3592_v48   ;;  %v1393_v23 = vsel %vm1361_vm0, %v838_v51, %v1133_v29 }
  0xff   : > { %v960_v52 = vpop.permute.xlu0 %959  ;;  %v3813_v3 = vmul.f32 %v1393_v23, %v3800_v62  ;;  %v822_v23 = vmul.f32 %v3789_v54, %v3644_v60 }
 0x100   : > { %v1035_v34 = vpop.permute.xlu1 %1034 }
 0x101   : > { %v1132_v49 = vmul.f32 %v3774_v40, %v1035_v34  ;;  %1788 = vperm.xlu0 %2912, %v3550_v45   ;;  %4856 = vst [vmem:[#allocation53_spill] sm:$0xff] %v3813_v3  ;;  %v3840_v34 = vld [vmem:[%s3776_s24] sm:$0xff] }
 0x102   : > { %1900 = vperm.xlu1 %2880, %v3299_v22  }
 0x103   : > { %v3805_v48 = vpop.permute.xlu0 %1245  ;;  %v1392_v2 = vsel %vm1360_vm1, %v837_v32, %v1132_v49 }
 0x104   : > { %v1151_v59 = vpop.permute.xlu1 %1150  ;;  %v3810_v1 = vmul.f32 %v1392_v2, %v3798_v58  ;;  %v1117_v2 = vmul.f32 %v3774_v40, %v960_v52 }
 0x105   : > { %1888 = vperm.xlu0 %2912, %v3287_v18  }
 0x106   : > { %4855 = vst [vmem:[#allocation52_spill] sm:$0xff] %v3810_v1  ;;  %2881 = vset.pattern.permute.xlu1 %v4823_v56  ;;  %v1488_v45 = vpack.c.bf16 %v3813_v3, %v3810_v1 }
 0x107   : > { %v3819_v22 = vpop.permute.xlu0 %1044  ;;  %974 = vperm.xlu1 %2881, %v3807_v27  }
 0x108   : > { %v1156_v29 = vpop.permute.xlu1 %1155  ;;  %2724 = vmatprep.subr.bf16.mxu0 %v1488_v45 }
 0x109   : > { %1720 = vperm.xlu0 %2912, %v3595_v20   ;;  %v876_v20 = vmul.f32 0.2, %v3443_v7 }
 0x10b   : > { %v3823_v55 = vpop.permute.xlu0 %1160  ;;  %2882 = vset.pattern.permute.xlu1 %v4824_v8  ;;  %v931_v49 = vmul.f32 1.442695, %v876_v20 }
 0x10c   : > { %1572 = vperm.xlu1 %2882, %v3363_v44   ;;  %v1313_v44 = vadd.f32 %v3768_v35, %v1156_v29  ;;  %v1312_v29 = vadd.f32 %v3768_v35, %v1151_v59 }
 0x10d   : > { %1628 = vperm.xlu0 %2912, %v3489_v38   ;;  %v3828_v18 = vpop.permute.xlu1 %1624  ;;  %3032 = vpow2.f32 %v931_v49 }
 0x10e   : > { %vm1345_vm2 = vcmp.gt.f32.partialorder %v1313_v44, 0.0  ;;  %vm1344_vm3 = vcmp.gt.f32.partialorder %v1312_v29, 0.0 }
 0x10f   : > { %v3830_v24 = vpop.permute.xlu0 %969  ;;  %v1377_v59 = vsel %vm1345_vm2, %v822_v23, %v1117_v2  ;;  %v859_v2 = vmul.f32 0.2, %v3311_v26 }
 0x110   : > { %1576 = vperm.xlu1 %2882, %v3355_v42   ;;  %v486_v42 = vunpack.c.0.s8 %v3840_v34 }
 0x111   : > { %1796 = vperm.xlu0 %2912, %v3628_v13   ;;  %v3834_v51 = vpop.permute.xlu1 %1784  ;;  %v487_v13 = vunpack.c.1.s8 %v3840_v34 }
 0x112   : > { %v3860_v20 = vcvt.s32.f32 %v486_v42 }
 0x113   : > { %v3837_v32 = vpop.permute.xlu0 %1255  ;;  %v3862_v60 = vcvt.s32.f32 %v487_v13 }
 0x114   : > { %1740 = vperm.xlu1 %2882, %v3602_v63  }
 0x115   : > { %1896 = vperm.xlu0 %2912, %v3278_v14   ;;  %v3845_v38 = vpop.permute.xlu1 %1884  ;;  %v821_v14 = vmul.f32 %v3789_v54, %v3634_v53  ;;  %v1409_v44 = vmul.f32 %v1377_v59, %v3862_v60 }
 0x117   : > { %v3852_v45 = vpop.permute.xlu0 %1054 }
 0x118   : > { %2883 = vset.pattern.permute.xlu1 %v4823_v56 }
 0x119   : > { %1728 = vperm.xlu0 %2912, %v3673_v6   ;;  %1260 = vperm.xlu1 %2883, %v3451_v9  }
 0x11a   : > { %v955_v63 = vpop.permute.xlu1 %954 }
 0x11b   : > { %v1116_v52 = vmul.f32 %v3774_v40, %v955_v63  ;;  %v3865_v3 = vpop.permute.xlu0 %1170 }
 0x11d   : > { %1636 = vperm.xlu0 %2912, %v3507_v57   ;;  %2884 = vset.pattern.permute.xlu1 %v4824_v8  ;;  %v1376_v53 = vsel %vm1344_vm3, %v821_v14, %v1116_v52 }
 0x11e   : > { %1972 = vperm.xlu1 %2884, %v3451_v9   ;;  %v1408_v6 = vmul.f32 %v1376_v53, %v3860_v20  ;;  %v3033_v9 = vpop.eup %3032 }
 0x11f   : > { %v3872_v49 = vpop.permute.xlu0 %979  ;;  %v3874_v42 = vpop.permute.xlu1 %1556 }
 0x120   : > { %v3876_v13 = vadd.f32 %v1409_v44, %v1408_v6  ;;  %v1480_v63 = vpack.c.bf16 %v1409_v44, %v1408_v6 }
 0x121   : > { %1804 = vperm.xlu0 %2912, %v3744_v37  }
 0x122   : > { %1976 = vperm.xlu1 %2884, %v3443_v7   ;;  %2725 = vmatpush3.bf16.msra.mxu0 %v1480_v63  ;;  %v897_v7 = vmul.f32 1.442695, %v859_v2  ;;  %v505_v2 = vunpack.c.3.s8 %v3779_v61 }
 0x123   : > { %v3880_v57 = vpop.permute.xlu0 %1265  ;;  %v3882_v23 = vpop.permute.xlu1 %1560 }
 0x124   : > { %3034 = vpow2.f32 %v897_v7  ;;  %v839_v7 = vmul.f32 %v3789_v54, %v3711_v12 }
 0x125   : > { %1904 = vperm.xlu0 %2912, %v3292_v19   ;;  %v878_v19 = vmul.f32 0.2, %v3461_v17 }
 0x126   : > { %2885 = vset.pattern.permute.xlu1 %v4823_v56 }
 0x127   : > { %v3887_v29 = vpop.permute.xlu0 %1064  ;;  %1069 = vperm.xlu1 %2885, %v3033_v9   ;;  %v3889_v14 = vpop.permute.xlu1 %1724 }
 0x129   : > { %1736 = vperm.xlu0 %2912, %v3807_v27   ;;  %v935_v27 = vmul.f32 1.442695, %v878_v19 }
 0x12b   : > { %v3892_v37 = vpop.permute.xlu0 %1180  ;;  %1185 = vperm.xlu1 %2885, %v3306_v25   ;;  %3036 = vpow2.f32 %v935_v27  ;;  %v3924_v27 = vcvt.s32.f32 %v505_v2 }
 0x12c   : > { %v1241_v52 = vpop.permute.xlu1 %1240 }
 0x12d   : > { %1644 = vperm.xlu0 %2912, %v3515_v5   ;;  %v1330_v44 = vadd.f32 %v3768_v35, %v1241_v52  ;;  %v861_v5 = vmul.f32 0.2, %v3323_v30 }
 0x12e   : > { %v3035_v30 = vpop.eup %3034 }
 0x12f   : > { %v3897_v59 = vpop.permute.xlu0 %989  ;;  %2886 = vset.pattern.permute.xlu1 %v4824_v8  ;;  %vm1362_vm4 = vcmp.gt.f32.partialorder %v1330_v44, 0.0  ;;  %v880_v44 = vmul.f32 0.2, %v3479_v28 }
 0x130   : > { %1648 = vperm.xlu1 %2886, %v3512_v0   ;;  %v1331_v0 = vadd.f32 %v3768_v35, %v3805_v48 }
 0x131   : > { %1812 = vperm.xlu0 %2912, %v3033_v9   ;;  %v3901_v53 = vpop.permute.xlu1 %1956  ;;  %v504_v9 = vunpack.c.2.s8 %v3779_v61  ;;  %v840_v61 = vmul.f32 %v3789_v54, %v3708_v31 }
 0x132   : > { %vm1363_vm5 = vcmp.gt.f32.partialorder %v1331_v0, 0.0 }
 0x133   : > { %v3903_v6 = vpop.permute.xlu0 %1275  ;;  %v3922_v48 = vcvt.s32.f32 %v504_v9 }
 0x134   : > { %4857 = vst [vmem:[#allocation54_spill] sm:$0xff] %v3903_v6  ;;  %1808 = vperm.xlu1 %2886, %v3610_v15   ;;  %v1134_v15 = vmul.f32 %v3774_v40, %v3819_v22  ;;  %v4897_v6 = vld [vmem:[#allocation26_spill] sm:$0xff] }
 0x135   : > { %v3908_v63 = vpop.permute.xlu1 %1960  ;;  %1912 = vperm.xlu0 %2912, %v3306_v25   ;;  %v901_v25 = vmul.f32 1.442695, %v861_v5  ;;  %v3942_v2 = vpop.eup %3036 }
 0x136   : > { %v1394_v12 = vsel %vm1362_vm4, %v839_v7, %v1134_v15  ;;  %v939_v7 = vmul.f32 1.442695, %v880_v44 }
 0x137   : > { %v3919_v52 = vpop.permute.xlu0 %1074  ;;  %3038 = vpow2.f32 %v901_v25  ;;  %v3935_v5 = vmul.f32 %v1394_v12, %v3922_v48  ;;  %v3957_v25 = vld [vmem:[%s4755_s4 + $0x48] sm:$0xff] }
 0x138   : > { %4858 = vst [vmem:[#allocation55_spill] sm:$0xff] %v3919_v52  ;;  %1908 = vperm.xlu1 %2886, %v3311_v26   ;;  %3040 = vpow2.f32 %v939_v7  ;;  %v882_v7 = vmul.f32 0.2, %v3497_v46  ;;  %v824_v46 = vmul.f32 %v3789_v54, %v3642_v10 }
 0x139   : > { %1744 = vperm.xlu0 %2912, %v3035_v30   ;;  %4860 = vst [vmem:[#allocation57_spill] sm:$0xff] %v3935_v5 }
 0x13a   : > { %v1050_v19 = vpop.permute.xlu1 %1049 }
 0x13b   : > { %v1135_v22 = vmul.f32 %v3774_v40, %v1050_v19  ;;  %v3929_v1 = vpop.permute.xlu0 %1190  ;;  %v4864_v19 = vld [vmem:[#allocation7_spill] sm:$0xff] }
 0x13c   : > { %4859 = vst [vmem:[#allocation56_spill] sm:$0xff] %v3929_v1  ;;  %2887 = vset.pattern.permute.xlu1 %v4823_v56 }
 0x13d   : > { %v1395_v26 = vsel %vm1363_vm5, %v840_v61, %v1135_v22  ;;  %984 = vperm.xlu1 %2887, %v3035_v30   ;;  %1652 = vperm.xlu0 %2912, %v3522_v16   ;;  %v863_v16 = vmul.f32 0.2, %v3341_v36 }
 0x13e   : > { %v1166_v0 = vpop.permute.xlu1 %1165  ;;  %v3938_v31 = vmul.f32 %v1395_v26, %v3924_v27 }
 0x13f   : > { %v3940_v9 = vpop.permute.xlu0 %999  ;;  %v905_v61 = vmul.f32 1.442695, %v863_v16  ;;  %v1315_v22 = vadd.f32 %v3768_v35, %v1166_v0  ;;  %v489_v16 = vunpack.c.3.s8 %v3840_v34  ;;  %v4867_v0 = vld [vmem:[#allocation18_spill] sm:$0xff] }
 0x140   : > { %4861 = vst [vmem:[#allocation58_spill] sm:$0xff] %v3938_v31  ;;  %4862 = vst [vmem:[#allocation59_spill] sm:$0xff] %v3940_v9  ;;  %v1489_v28 = vpack.c.bf16 %v3938_v31, %v3935_v5  ;;  %v1119_v31 = vmul.f32 %v3774_v40, %v3830_v24 }
 0x141   : > { %2888 = vset.pattern.permute.xlu1 %v4824_v8  ;;  %1820 = vperm.xlu0 %2912, %v3942_v2   ;;  %v3965_v36 = vpop.eup %3038  ;;  %3042 = vpow2.f32 %v905_v61  ;;  %vm1347_vm6 = vcmp.gt.f32.partialorder %v1315_v22, 0.0 }
 0x142   : > { %1580 = vperm.xlu1 %2888, %v3381_v50   ;;  %2726 = vmatprep.subr.bf16.mxu0 %v1489_v28  ;;  %v1314_v28 = vadd.f32 %v3768_v35, %v3823_v55  ;;  %v943_v55 = vmul.f32 1.442695, %v882_v7  ;;  %v1379_v22 = vsel %vm1347_vm6, %v824_v46, %v1119_v31  ;;  %v4004_v7 = vld [vmem:[%s4755_s4 + $0x60] sm:$0xff] }
 0x143   : > { %v3950_v15 = vpop.permute.xlu0 %1285  ;;  %v3952_v30 = vpop.permute.xlu1 %1632  ;;  %4870 = vst [vmem:[#allocation63_spill] sm:$0xff] %v4004_v7 }
 0x144   : > { %4863 = vst [vmem:[#allocation60_spill] sm:$0xff] %v3950_v15  ;;  %vm1346_vm7 = vcmp.gt.f32.partialorder %v1314_v28, 0.0  ;;  %v865_v28 = vmul.f32 0.2, %v4004_v7  ;;  %3044 = vpow2.f32 %v943_v55  ;;  %v1136_v15 = vmul.f32 %v3774_v40, %v3852_v45 }
 0x145   : > { %1920 = vperm.xlu0 %2912, %v3957_v25  }
 0x146   : > { %1584 = vperm.xlu1 %2888, %v4864_v19   ;;  %v488_v19 = vunpack.c.2.s8 %v3840_v34  ;;  %v3990_v34 = vcvt.s32.f32 %v489_v16  ;;  %v4017_v16 = vld [vmem:[%s4755_s4 + $0x58] sm:$0xff] }
 0x147   : > { %v3961_v12 = vpop.permute.xlu0 %1084  ;;  %v3963_v50 = vpop.permute.xlu1 %1792 }
 0x148   : > { %4865 = vst [vmem:[#allocation7_spill] sm:$0xff] %v3961_v12  ;;  %v3992_v24 = vcvt.s32.f32 %v488_v19 }
 0x149   : > { %1752 = vperm.xlu0 %2912, %v3965_v36  }
 0x14a   : > { %1748 = vperm.xlu1 %2888, %v3617_v33   ;;  %v3982_v33 = vpop.eup %3040 }
 0x14b   : > { %v3970_v44 = vpop.permute.xlu0 %1200  ;;  %v3972_v26 = vpop.permute.xlu1 %1892 }
 0x14c   : > { %4866 = vst [vmem:[#allocation61_spill] sm:$0xff] %v3970_v44  ;;  %v4010_v31 = vpop.eup %3042 }
 0x14d   : > { %1660 = vperm.xlu0 %2912, %v4867_v0   ;;  %v823_v0 = vmul.f32 %v3789_v54, %v3631_v11  ;;  %v1411_v11 = vmul.f32 %v1379_v22, %v3990_v34 }
 0x14e   : > { %2889 = vset.pattern.permute.xlu1 %v4823_v56 }
 0x14f   : > { %v3987_v61 = vpop.permute.xlu0 %1009  ;;  %1270 = vperm.xlu1 %2889, %v3469_v21  }
 0x150   : > { %4868 = vst [vmem:[#allocation18_spill] sm:$0xff] %v3987_v61  ;;  %v965_v5 = vpop.permute.xlu1 %964 }
 0x151   : > { %v1118_v44 = vmul.f32 %v3774_v40, %v965_v5  ;;  %1828 = vperm.xlu0 %2912, %v3982_v33  }
 0x153   : > { %v1378_v10 = vsel %vm1346_vm7, %v823_v0, %v1118_v44  ;;  %v3998_v12 = vpop.permute.xlu0 %1295  ;;  %2890 = vset.pattern.permute.xlu1 %v4824_v8  ;;  %v909_v0 = vmul.f32 1.442695, %v865_v28  ;;  %v4873_v28 = vld [vmem:[#allocation20_spill] sm:$0xff] }
 0x154   : > { %4869 = vst [vmem:[#allocation62_spill] sm:$0xff] %v3998_v12  ;;  %1980 = vperm.xlu1 %2890, %v3469_v21   ;;  %v1410_v5 = vmul.f32 %v1378_v10, %v3992_v24  ;;  %v884_v12 = vmul.f32 0.2, %v3718_v43 }
 0x155   : > { %v4012_v44 = vpop.permute.xlu1 %1564  ;;  %1928 = vperm.xlu0 %2912, %v4017_v16   ;;  %3046 = vpow2.f32 %v909_v0  ;;  %v4880_v0 = vld [vmem:[#allocation16_spill] sm:$0xff] }
 0x156   : > { %v1441_v19 = vadd.f32 %v3876_v13, %v1410_v5  ;;  %v1481_v46 = vpack.c.bf16 %v1411_v11, %v1410_v5  ;;  %v947_v5 = vmul.f32 1.442695, %v884_v12  ;;  %v4055_v12 = vld [vmem:[%s4755_s4 + $0x68] sm:$0xff] }
 0x157   : > { %v4021_v55 = vpop.permute.xlu0 %1094  ;;  %4878 = vst [vmem:[#allocation69_spill] sm:$0xff] %v4055_v12 }
 0x158   : > { %4871 = vst [vmem:[#allocation64_spill] sm:$0xff] %v4021_v55  ;;  %1984 = vperm.xlu1 %2890, %v3461_v17   ;;  %2727 = vmatpush3.bf16.msra.mxu0 %v1481_v46  ;;  %v4024_v21 = vadd.f32 %v1441_v19, %v1411_v11  ;;  %v4037_v17 = vpop.eup %3044  ;;  %3048 = vpow2.f32 %v947_v5  ;;  %v4882_v55 = vld [vmem:[#allocation24_spill] sm:$0xff] }
 0x159   : > { %v4026_v22 = vpop.permute.xlu1 %1568  ;;  %1760 = vperm.xlu0 %2912, %v4010_v31   ;;  %4874 = vst [vmem:[#allocation20_spill] sm:$0xff] %v4037_v17 }
 0x15b   : > { %v4029_v10 = vpop.permute.xlu0 %1210 }
 0x15c   : > { %4872 = vst [vmem:[#allocation65_spill] sm:$0xff] %v4029_v10  ;;  %2891 = vset.pattern.permute.xlu1 %v4823_v56  ;;  %v4066_v10 = vld [vmem:[%s3776_s24 + $0x28] sm:$0xff] }
 0x15d   : > { %1079 = vperm.xlu1 %2891, %v3942_v2   ;;  %v4034_v13 = vpop.permute.xlu1 %1732  ;;  %1668 = vperm.xlu0 %2912, %v4873_v28   ;;  %v4048_v2 = vld [vmem:[%s4755_s4 + $0x70] sm:$0xff] }
 0x15e   : > { %4877 = vst [vmem:[#allocation68_spill] sm:$0xff] %v4048_v2  ;;  %v867_v46 = vmul.f32 0.2, %v4048_v2 }
 0x15f   : > { %v4039_v11 = vpop.permute.xlu0 %1019 }
 0x160   : > { %4875 = vst [vmem:[#allocation66_spill] sm:$0xff] %v4039_v11  ;;  %v913_v11 = vmul.f32 1.442695, %v867_v46  ;;  %v841_v46 = vmul.f32 %v3789_v54, %v3723_v41 }
 0x161   : > { %1195 = vperm.xlu1 %2891, %v3957_v25   ;;  %1836 = vperm.xlu0 %2912, %v4037_v17   ;;  %v4058_v25 = vpop.eup %3046 }
 0x162   : > { %v1251_v19 = vpop.permute.xlu1 %1250  ;;  %4879 = vst [vmem:[#allocation70_spill] sm:$0xff] %v4058_v25  ;;  %3050 = vpow2.f32 %v913_v11  ;;  %v3067_v11 = vld [vmem:[%s4755_s4 + $0x40] sm:$0xff] }
 0x163   : > { %v4043_v43 = vpop.permute.xlu0 %1305  ;;  %v1332_v5 = vadd.f32 %v3768_v35, %v1251_v19  ;;  %v4082_v19 = vpop.eup %3048 }
 0x164   : > { %4876 = vst [vmem:[#allocation67_spill] sm:$0xff] %v4043_v43  ;;  %4884 = vst [vmem:[#allocation71_spill] sm:$0xff] %v4082_v19 }
 0x165   : > { %2892 = vset.pattern.permute.xlu1 %v4824_v8  ;;  %1936 = vperm.xlu0 %2912, %v4055_v12   ;;  %vm1364_vm8 = vcmp.gt.f32.partialorder %v1332_v5, 0.0 }
 0x166   : > { %1656 = vperm.xlu1 %2892, %v4880_v0   ;;  %v506_v0 = vunpack.c.0.s8 %v4066_v10  ;;  %v1396_v45 = vsel %vm1364_vm8, %v841_v46, %v1136_v15  ;;  %v4891_v46 = vld [vmem:[#allocation9_spill] sm:$0xff] }
 0x167   : > { %v4061_v28 = vpop.permute.xlu0 %809  ;;  %v4063_v43 = vpop.permute.xlu1 %1964 }
 0x168   : > { %4881 = vst [vmem:[#allocation16_spill] sm:$0xff] %v4061_v28  ;;  %v507_v28 = vunpack.c.1.s8 %v4066_v10  ;;  %v4091_v9 = vcvt.s32.f32 %v506_v0 }
 0x169   : > { %1768 = vperm.xlu0 %2912, %v4058_v25  }
 0x16a   : > { %1816 = vperm.xlu1 %2892, %v4882_v55   ;;  %v1333_v55 = vadd.f32 %v3768_v35, %v3837_v32  ;;  %v4093_v1 = vcvt.s32.f32 %v507_v28  ;;  %v4104_v0 = vmul.f32 %v1396_v45, %v4091_v9 }
 0x16b   : > { %v4071_v61 = vpop.permute.xlu0 %1104  ;;  %v4073_v2 = vpop.permute.xlu1 %1968 }
 0x16c   : > { %4883 = vst [vmem:[#allocation24_spill] sm:$0xff] %v4071_v61  ;;  %vm1365_vm9 = vcmp.gt.f32.partialorder %v1333_v55, 0.0  ;;  %4887 = vst [vmem:[#allocation74_spill] sm:$0xff] %v4104_v0  ;;  %v4115_v15 = vpop.eup %3050 }
 0x16d   : > { %1676 = vperm.xlu0 %2912, %v3727_v47   ;;  %v842_v47 = vmul.f32 %v3789_v54, %v3720_v39  ;;  %v4112_v39 = vld [vmem:[%s4755_s4 + $0x78] sm:$0xff]  ;;  %4890 = vst [vmem:[#allocation77_spill] sm:$0xff] %v4115_v15 }
 0x16e   : > { %1916 = vperm.xlu1 %2892, %v3067_v11   ;;  %4889 = vst [vmem:[#allocation76_spill] sm:$0xff] %v4112_v39 }
 0x16f   : > { %v4089_v61 = vpop.permute.xlu0 %1220 }
 0x170   : > { %4885 = vst [vmem:[#allocation72_spill] sm:$0xff] %v4089_v61  ;;  %v1060_v41 = vpop.permute.xlu1 %1059 }
 0x171   : > { %v1137_v25 = vmul.f32 %v3774_v40, %v1060_v41  ;;  %1844 = vperm.xlu0 %2912, %v4082_v19   ;;  %v4892_v41 = vld [vmem:[#allocation21_spill] sm:$0xff] }
 0x172   : > { %2893 = vset.pattern.permute.xlu1 %v4823_v56  ;;  %v4896_v19 = vld [vmem:[#allocation25_spill] sm:$0xff] }
 0x173   : > { %v1397_v32 = vsel %vm1365_vm9, %v842_v47, %v1137_v25  ;;  %v4100_v5 = vpop.permute.xlu0 %1029  ;;  %994 = vperm.xlu1 %2893, %v3965_v36  }
 0x174   : > { %4886 = vst [vmem:[#allocation73_spill] sm:$0xff] %v4100_v5  ;;  %v1176_v28 = vpop.permute.xlu1 %1175  ;;  %v4107_v11 = vmul.f32 %v1397_v32, %v4093_v1  ;;  %v4893_v32 = vld [vmem:[#allocation8_spill] sm:$0xff]  ;;  %v4894_v5 = vld [vmem:[#allocation22_spill] sm:$0xff] }
 0x175   : > { %1944 = vperm.xlu0 %2912, %v4112_v39  }
 0x176   : > { %4888 = vst [vmem:[#allocation75_spill] sm:$0xff] %v4107_v11  ;;  %v1490_v36 = vpack.c.bf16 %v4107_v11, %v4104_v0  ;;  %v2032_v11 = vadd.f32 %v4892_v41, %v3782_v4 }
 0x177   : > { %2894 = vset.pattern.permute.xlu1 %v4824_v8 }
 0x178   : > { %v1949_v25 = vpop.permute.xlu0 %1948  ;;  %1588 = vperm.xlu1 %2894, %v4891_v46   ;;  %2728 = vmatprep.subr.bf16.mxu0 %v1490_v36  ;;  %v4133_v46 = vld [vmem:[%s3776_s24 + $0x8] sm:$0xff]  ;;  %v4895_v36 = vld [vmem:[#allocation23_spill] sm:$0xff]  ;;  %vm2064_vm11 = vcmp.gt.f32.partialorder %v2032_v11, 0.0  ;;  %v3069_v11 = vld [vmem:[%s4755_s4 + $0xd0] sm:$0xff] }
 0x179   : > { %v4121_v55 = vpop.permute.xlu1 %1640  ;;  %1776 = vperm.xlu0 %2912, %v4115_v15   ;;  %v2031_v47 = vadd.f32 %v4892_v41, %v1949_v25  ;;  %v1867_v0 = vmul.f32 %v4895_v36, %v3834_v51  ;;  %v1317_v25 = vadd.f32 %v3768_v35, %v1176_v28  ;;  %v826_v51 = vmul.f32 %v3789_v54, %v4897_v6 }
 0x17a   : > { %v1121_v6 = vmul.f32 %v3774_v40, %v3872_v49 }
 0x17b   : > { %vm2063_vm10 = vcmp.gt.f32.partialorder %v2031_v47, 0.0  ;;  %v490_v47 = vunpack.c.0.s8 %v4133_v46  ;;  %vm1349_vm12 = vcmp.gt.f32.partialorder %v1317_v25, 0.0 }
 0x17c   : > { %v1621_v45 = vpop.permute.xlu0 %1620  ;;  %1592 = vperm.xlu1 %2894, %v4893_v32   ;;  %v491_v32 = vunpack.c.1.s8 %v4133_v46 }
 0x17d   : > { %v1703_v61 = vmul.f32 %v4894_v5, %v1621_v45  ;;  %v4127_v39 = vpop.permute.xlu1 %1800  ;;  %2915 = vset.pattern.permute.xlu0 %v4823_v56  ;;  %v1704_v45 = vmul.f32 %v4894_v5, %v3828_v18  ;;  %v4173_v49 = vcvt.s32.f32 %v490_v47  ;;  %v2033_v47 = vadd.f32 %v4892_v41, %v3901_v53  ;;  %v3070_v53 = vld [vmem:[%s4755_s4 + $0xd8] sm:$0xff] }
 0x17f   : > { %v2095_v4 = vsel %vm2063_vm10, %v1703_v61, %v1867_v0  ;;  %v4899_v61 = vld [vmem:[#allocation27_spill] sm:$0xff]  ;;  %vm2065_vm0 = vcmp.gt.f32.partialorder %v2033_v47, 0.0  ;;  %v1689_v47 = vmul.f32 %v4894_v5, %v4012_v44 }
 0x180   : > { %v1789_v15 = vpop.permute.xlu0 %1788  ;;  %1756 = vperm.xlu1 %2894, %v4896_v19   ;;  %v1316_v19 = vadd.f32 %v3768_v35, %v3865_v3  ;;  %v4152_v18 = vmul.f32 %v2095_v4, %v3798_v58  ;;  %v825_v0 = vmul.f32 %v3789_v54, %v4899_v61  ;;  %v2015_v58 = vadd.f32 %v4892_v41, %v3845_v38 }
 0x181   : > { %v1868_v52 = vmul.f32 %v4895_v36, %v1789_v15  ;;  %v4143_v7 = vpop.permute.xlu1 %1900  ;;  %v1687_v38 = vmul.f32 %v4894_v5, %v3874_v42 }
 0x182   : > { %vm1348_vm14 = vcmp.gt.f32.partialorder %v1316_v19, 0.0  ;;  %vm2047_vm15 = vcmp.gt.f32.partialorder %v2015_v58, 0.0  ;;  %v2034_v58 = vadd.f32 %v4892_v41, %v3908_v63  ;;  %v1706_v63 = vmul.f32 %v4894_v5, %v3952_v30 }
 0x183   : > { %v2096_v28 = vsel %vm2064_vm11, %v1704_v45, %v1868_v52  ;;  %v4161_v52 = vcvt.s32.f32 %v491_v32  ;;  %v1381_v32 = vsel %vm1349_vm12, %v826_v51, %v1121_v6  ;;  %v2017_v30 = vadd.f32 %v4892_v41, %v3972_v26 }
 0x184   : > { %v1889_v12 = vpop.permute.xlu0 %1888  ;;  %2895 = vset.pattern.permute.xlu1 %v4823_v56  ;;  %v4155_v15 = vmul.f32 %v2096_v28, %v3800_v62  ;;  %v1688_v62 = vmul.f32 %v4894_v5, %v3882_v23  ;;  %vm2066_vm1 = vcmp.gt.f32.partialorder %v2034_v58, 0.0 }
 0x185   : > { %v2016_v3 = vadd.f32 %v4892_v41, %v1889_v12  ;;  %1280 = vperm.xlu1 %2895, %v3069_v11   ;;  %v1852_v12 = vmul.f32 %v4895_v36, %v3889_v14  ;;  %v1413_v14 = vmul.f32 %v1381_v32, %v4161_v52  ;;  %vm2049_vm3 = vcmp.gt.f32.partialorder %v2017_v30, 0.0 }
 0x186   : > { %4898 = vst [vmem:[#allocation9_spill] sm:$0xff] %v4155_v15  ;;  %v975_v45 = vpop.permute.xlu1 %974  ;;  %v2191_v4 = vpack.c.bf16 %v4155_v15, %v4152_v18 }
 0x187   : > { %vm2048_vm13 = vcmp.gt.f32.partialorder %v2016_v3, 0.0  ;;  %v1120_v28 = vmul.f32 %v3774_v40, %v975_v45 }
 0x188   : > { %v1721_v61 = vpop.permute.xlu0 %1720  ;;  %2746 = vmatprep.subr.bf16.mxu1 %v2191_v4  ;;  %v2080_v23 = vsel %vm2048_vm13, %v1688_v62, %v1852_v12 }
 0x189   : > { %v1380_v17 = vsel %vm1348_vm14, %v825_v0, %v1120_v28  ;;  %v1851_v15 = vmul.f32 %v4895_v36, %v1721_v61  ;;  %2896 = vset.pattern.permute.xlu1 %v4824_v8  ;;  %v2112_v62 = vmul.f32 %v2080_v23, %v3862_v60 }
 0x18a   : > { %1988 = vperm.xlu1 %2896, %v3069_v11   ;;  %v1412_v25 = vmul.f32 %v1380_v17, %v4173_v49 }
 0x18b   : > { %v4187_v51 = vpop.permute.xlu1 %1572  ;;  %v2079_v19 = vsel %vm2047_vm15, %v1687_v38, %v1851_v15 }
 0x18c   : > { %v1629_v6 = vpop.permute.xlu0 %1628  ;;  %v1443_v42 = vadd.f32 %v4024_v21, %v1412_v25  ;;  %v1482_v0 = vpack.c.bf16 %v1413_v14, %v1412_v25  ;;  %v2111_v3 = vmul.f32 %v2079_v19, %v3860_v20  ;;  %v1869_v20 = vmul.f32 %v4895_v36, %v3963_v50 }
 0x18d   : > { %v1705_v11 = vmul.f32 %v4894_v5, %v1629_v6  ;;  %v1690_v25 = vmul.f32 %v4894_v5, %v4026_v22  ;;  %v2035_v22 = vadd.f32 %v4892_v41, %v4063_v43 }
 0x18e   : > { %1992 = vperm.xlu1 %2896, %v3070_v53   ;;  %2729 = vmatpush3.bf16.msra.mxu0 %v1482_v0  ;;  %v2143_v17 = vadd.f32 %v2112_v62, %v2111_v3  ;;  %v2183_v15 = vpack.c.bf16 %v2112_v62, %v2111_v3  ;;  %v4198_v45 = vadd.f32 %v1443_v42, %v1413_v14 }
 0x18f   : > { %v4202_v21 = vpop.permute.xlu1 %1576  ;;  %v2097_v4 = vsel %vm2065_vm0, %v1705_v11, %v1869_v20  ;;  %v2036_v62 = vadd.f32 %v4892_v41, %v4073_v2  ;;  %v1871_v53 = vmul.f32 %v4895_v36, %v4127_v39  ;;  %vm2067_vm4 = vcmp.gt.f32.partialorder %v2035_v22, 0.0 }
 0x190   : > { %v1797_v60 = vpop.permute.xlu0 %1796  ;;  %2747 = vmatpush3.bf16.msra.mxu1 %v2183_v15  ;;  %v4210_v50 = vmul.f32 %v2097_v4, %v3922_v48  ;;  %v4901_v15 = vld [vmem:[#allocation28_spill] sm:$0xff]  ;;  %v1708_v20 = vmul.f32 %v4894_v5, %v4121_v55  ;;  %v509_v39 = vunpack.c.3.s8 %v4066_v10  ;;  %v4902_v4 = vld [vmem:[#allocation42_spill] sm:$0xff]  ;;  %v3071_v55 = vld [vmem:[%s4755_s4 + $0x50] sm:$0xff] }
 0x191   : > { %v1870_v12 = vmul.f32 %v4895_v36, %v1797_v60  ;;  %v508_v60 = vunpack.c.2.s8 %v4066_v10  ;;  %vm2068_vm5 = vcmp.gt.f32.partialorder %v2036_v62, 0.0  ;;  %v4903_v10 = vld [vmem:[#allocation43_spill] sm:$0xff] }
 0x192   : > { %2897 = vset.pattern.permute.xlu1 %v4823_v56 }
 0x193   : > { %v2098_v32 = vsel %vm2066_vm1, %v1706_v63, %v1870_v12  ;;  %1089 = vperm.xlu1 %2897, %v3982_v33   ;;  %v1741_v28 = vpop.permute.xlu1 %1740  ;;  %v1854_v33 = vmul.f32 %v4895_v36, %v4034_v13  ;;  %v844_v12 = vmul.f32 %v3789_v54, %v4902_v4 }
 0x194   : > { %v1897_v61 = vpop.permute.xlu0 %1896  ;;  %v4213_v38 = vmul.f32 %v2098_v32, %v3924_v27 }
 0x195   : > { %v2018_v23 = vadd.f32 %v4892_v41, %v1897_v61  ;;  %v1335_v61 = vadd.f32 %v3768_v35, %v3880_v57  ;;  %v540_v57 = vcvt.s32.f32 %v508_v60 }
 0x196   : > { %v2192_v14 = vpack.c.bf16 %v4213_v38, %v4210_v50 }
 0x197   : > { %vm2050_vm2 = vcmp.gt.f32.partialorder %v2018_v23, 0.0  ;;  %1205 = vperm.xlu1 %2897, %v4017_v16   ;;  %v4900_v16 = vld [vmem:[#allocation17_spill] sm:$0xff]  ;;  %vm1367_vm8 = vcmp.gt.f32.partialorder %v1335_v61, 0.0 }
 0x198   : > { %v1729_v48 = vpop.permute.xlu0 %1728  ;;  %2748 = vmatprep.subr.bf16.mxu1 %v2192_v14  ;;  %v1261_v27 = vpop.permute.xlu1 %1260  ;;  %v2082_v19 = vsel %vm2050_vm2, %v1690_v25, %v1854_v33  ;;  %v843_v25 = vmul.f32 %v3789_v54, %v4903_v10  ;;  %v1138_v33 = vmul.f32 %v3774_v40, %v3887_v29  ;;  %v4906_v61 = vld [vmem:[#allocation33_spill] sm:$0xff] }
 0x199   : > { %v1853_v26 = vmul.f32 %v4895_v36, %v1729_v48  ;;  %v2114_v13 = vmul.f32 %v2082_v19, %v3990_v34  ;;  %v1334_v34 = vadd.f32 %v3768_v35, %v1261_v27  ;;  %v2019_v27 = vadd.f32 %v4892_v41, %v4143_v7 }
 0x19a   : > { %v541_v19 = vcvt.s32.f32 %v509_v39  ;;  %v1691_v7 = vmul.f32 %v4894_v5, %v4187_v51  ;;  %v4905_v39 = vld [vmem:[#allocation10_spill] sm:$0xff] }
 0x19b   : > { %v2081_v6 = vsel %vm2049_vm3, %v1689_v47, %v1853_v26  ;;  %2898 = vset.pattern.permute.xlu1 %v4824_v8  ;;  %vm1366_vm6 = vcmp.gt.f32.partialorder %v1334_v34, 0.0  ;;  %v1692_v47 = vmul.f32 %v4894_v5, %v4202_v21  ;;  %v1856_v26 = vmul.f32 %v4895_v36, %v1741_v28 }
 0x19c   : > { %v1637_v42 = vpop.permute.xlu0 %1636  ;;  %1664 = vperm.xlu1 %2898, %v4900_v16   ;;  %v2113_v0 = vmul.f32 %v2081_v6, %v3992_v24  ;;  %v1398_v6 = vsel %vm1366_vm6, %v843_v25, %v1138_v33  ;;  %vm2051_vm9 = vcmp.gt.f32.partialorder %v2019_v27, 0.0  ;;  %v493_v25 = vunpack.c.3.s8 %v4133_v46 }
 0x19d   : > { %v1707_v3 = vmul.f32 %v4894_v5, %v1637_v42  ;;  %v4235_v44 = vpop.permute.xlu1 %1972  ;;  %v4280_v28 = vmul.f32 %v1398_v6, %v540_v57  ;;  %v492_v33 = vunpack.c.2.s8 %v4133_v46  ;;  %v1318_v27 = vadd.f32 %v3768_v35, %v3892_v37  ;;  %v4908_v6 = vld [vmem:[#allocation30_spill] sm:$0xff] }
 0x19e   : > { %v2144_v58 = vadd.f32 %v2143_v17, %v2113_v0  ;;  %v2184_v11 = vpack.c.bf16 %v2114_v13, %v2113_v0  ;;  %v525_v46 = vcvt.s32.f32 %v493_v25  ;;  %v827_v37 = vmul.f32 %v3789_v54, %v4908_v6 }
 0x19f   : > { %v2099_v63 = vsel %vm2067_vm4, %v1707_v3, %v1871_v53  ;;  %v4904_v53 = vld [vmem:[#allocation11_spill] sm:$0xff]  ;;  %vm1350_vm13 = vcmp.gt.f32.partialorder %v1318_v27, 0.0  ;;  %v4913_v27 = vld [vmem:[#allocation54_spill] sm:$0xff] }
 0x1a0   : > { %v1805_v43 = vpop.permute.xlu0 %1804  ;;  %2749 = vmatpush3.bf16.msra.mxu1 %v2184_v11  ;;  %1824 = vperm.xlu1 %2898, %v4901_v15   ;;  %v2145_v24 = vadd.f32 %v2144_v58, %v2114_v13  ;;  %v4256_v30 = vmul.f32 %v2099_v63, %v4091_v9  ;;  %v2037_v63 = vadd.f32 %v4892_v41, %v4235_v44 }
 0x1a1   : > { %v1872_v2 = vmul.f32 %v4895_v36, %v1805_v43  ;;  %v1977_v17 = vpop.permute.xlu1 %1976 }
 0x1a2   : > { %v2038_v43 = vadd.f32 %v4892_v41, %v1977_v17  ;;  %vm2069_vm11 = vcmp.gt.f32.partialorder %v2037_v63, 0.0 }
 0x1a3   : > { %v2100_v32 = vsel %vm2068_vm5, %v1708_v20, %v1872_v2 }
 0x1a4   : > { %v1905_v23 = vpop.permute.xlu0 %1904  ;;  %1924 = vperm.xlu1 %2898, %v3071_v55   ;;  %v4259_v14 = vmul.f32 %v2100_v32, %v4093_v1  ;;  %vm2070_vm10 = vcmp.gt.f32.partialorder %v2038_v43, 0.0 }
 0x1a5   : > { %v2020_v48 = vadd.f32 %v4892_v41, %v1905_v23 }
 0x1a6   : > { %v1070_v9 = vpop.permute.xlu1 %1069  ;;  %v2193_v1 = vpack.c.bf16 %v4259_v14, %v4256_v30 }
 0x1a7   : > { %vm2052_vm7 = vcmp.gt.f32.partialorder %v2020_v48, 0.0  ;;  %v1139_v29 = vmul.f32 %v3774_v40, %v1070_v9  ;;  %v1123_v9 = vmul.f32 %v3774_v40, %v3897_v59 }
 0x1a8   : > { %v1737_v22 = vpop.permute.xlu0 %1736  ;;  %2750 = vmatprep.subr.bf16.mxu1 %v2193_v1  ;;  %2899 = vset.pattern.permute.xlu1 %v4823_v56  ;;  %v2084_v21 = vsel %vm2052_vm7, %v1692_v47, %v1856_v26  ;;  %v4907_v47 = vld [vmem:[#allocation29_spill] sm:$0xff]  ;;  %v3072_v1 = vld [vmem:[%s4755_s4 + $0xe0] sm:$0xff]  ;;  %v524_v26 = vcvt.s32.f32 %v492_v33 }
 0x1a9   : > { %v1399_v13 = vsel %vm1367_vm8, %v844_v12, %v1139_v29  ;;  %v1855_v42 = vmul.f32 %v4895_v36, %v1737_v22  ;;  %1004 = vperm.xlu1 %2899, %v4010_v31   ;;  %v2116_v62 = vmul.f32 %v2084_v21, %v4161_v52 }
 0x1aa   : > { %v1186_v16 = vpop.permute.xlu1 %1185  ;;  %v4282_v0 = vmul.f32 %v1399_v13, %v541_v19 }
 0x1ab   : > { %v2083_v3 = vsel %vm2051_vm9, %v1691_v7, %v1855_v42  ;;  %v1319_v12 = vadd.f32 %v3768_v35, %v1186_v16 }
 0x1ac   : > { %v1645_v58 = vpop.permute.xlu0 %1644  ;;  %v1491_v11 = vpack.c.bf16 %v4282_v0, %v4280_v28  ;;  %v2115_v51 = vmul.f32 %v2083_v3, %v4173_v49 }
 0x1ad   : > { %2900 = vset.pattern.permute.xlu1 %v4824_v8  ;;  %v1709_v2 = vmul.f32 %v4894_v5, %v1645_v58  ;;  %vm1351_vm12 = vcmp.gt.f32.partialorder %v1319_v12, 0.0 }
 0x1ae   : > { %1596 = vperm.xlu1 %2900, %v4904_v53   ;;  %2730 = vmatprep.subr.bf16.mxu0 %v1491_v11  ;;  %v2146_v31 = vadd.f32 %v2145_v24, %v2115_v51  ;;  %v2185_v34 = vpack.c.bf16 %v2116_v62, %v2115_v51  ;;  %v3073_v53 = vld [vmem:[%s4755_s4 + $0xe8] sm:$0xff] }
 0x1af   : > { %v1649_v15 = vpop.permute.xlu1 %1648 }
 0x1b0   : > { %v1710_v20 = vmul.f32 %v4894_v5, %v1649_v15  ;;  %v1813_v60 = vpop.permute.xlu0 %1812  ;;  %2751 = vmatpush3.bf16.msra.mxu1 %v2185_v34  ;;  %v2147_v52 = vadd.f32 %v2146_v31, %v2116_v62 }
 0x1b1   : > { %v1874_v49 = vmul.f32 %v4895_v36, %v1813_v60 }
 0x1b2   : > { %1600 = vperm.xlu1 %2900, %v4905_v39   ;;  %v4910_v39 = vld [vmem:[#allocation69_spill] sm:$0xff] }
 0x1b3   : > { %v1809_v24 = vpop.permute.xlu1 %1808  ;;  %v2102_v4 = vsel %vm2070_vm10, %v1710_v20, %v1874_v49 }
 0x1b4   : > { %v1873_v17 = vmul.f32 %v4895_v36, %v1809_v24  ;;  %v4302_v44 = vmul.f32 %v2102_v4, %v541_v19  ;;  %v1913_v10 = vpop.permute.xlu0 %1912 }
 0x1b5   : > { %v2022_v34 = vadd.f32 %v4892_v41, %v1913_v10  ;;  %v4912_v10 = vld [vmem:[#allocation38_spill] sm:$0xff] }
 0x1b6   : > { %v2101_v32 = vsel %vm2069_vm11, %v1709_v2, %v1873_v17  ;;  %1764 = vperm.xlu1 %2900, %v4906_v61   ;;  %v4342_v61 = vld [vmem:[%s3776_s24 + $0x30] sm:$0xff] }
 0x1b7   : > { %v1909_v23 = vpop.permute.xlu1 %1908  ;;  %v4300_v55 = vmul.f32 %v2101_v32, %v540_v57  ;;  %v828_v57 = vmul.f32 %v3789_v54, %v4907_v47  ;;  %vm2054_vm15 = vcmp.gt.f32.partialorder %v2022_v34, 0.0  ;;  %v510_v33 = vunpack.c.0.s8 %v4342_v61 }
 0x1b8   : > { %v1745_v7 = vpop.permute.xlu0 %1744  ;;  %v2021_v21 = vadd.f32 %v4892_v41, %v1909_v23  ;;  %v1337_v47 = vadd.f32 %v3768_v35, %v4913_v27 }
 0x1b9   : > { %v2194_v48 = vpack.c.bf16 %v4302_v44, %v4300_v55  ;;  %v1383_v29 = vsel %vm1351_vm12, %v828_v57, %v1123_v9  ;;  %v1857_v42 = vmul.f32 %v4895_v36, %v1745_v7  ;;  %v4914_v57 = vld [vmem:[#allocation63_spill] sm:$0xff]  ;;  %v4915_v9 = vld [vmem:[#allocation46_spill] sm:$0xff] }
 0x1ba   : > { %2901 = vset.pattern.permute.xlu1 %v4823_v56  ;;  %v1415_v13 = vmul.f32 %v1383_v29, %v525_v46  ;;  %vm2053_vm14 = vcmp.gt.f32.partialorder %v2021_v21, 0.0  ;;  %v4917_v29 = vld [vmem:[#allocation45_spill] sm:$0xff]  ;;  %vm1369_vm1 = vcmp.gt.f32.partialorder %v1337_v47, 0.0 }
 0x1bb   : > { %1290 = vperm.xlu1 %2901, %v3072_v1   ;;  %2752 = vmatprep.subr.bf16.mxu1 %v2194_v48  ;;  %v511_v48 = vunpack.c.1.s8 %v4342_v61 }
 0x1bc   : > { %v985_v19 = vpop.permute.xlu1 %984 }
 0x1bd   : > { %v1122_v22 = vmul.f32 %v3774_v40, %v985_v19 }
 0x1bf   : > { %v1382_v59 = vsel %vm1350_vm13, %v827_v37, %v1122_v22  ;;  %2902 = vset.pattern.permute.xlu1 %v4824_v8  ;;  %v543_v37 = vcvt.s32.f32 %v511_v48  ;;  %v846_v22 = vmul.f32 %v3789_v54, %v4917_v29 }
 0x1c0   : > { %1996 = vperm.xlu1 %2902, %v3072_v1   ;;  %v1414_v16 = vmul.f32 %v1382_v59, %v524_v26  ;;  %v845_v1 = vmul.f32 %v3789_v54, %v4915_v9  ;;  %v1653_v59 = vpop.permute.xlu0 %1652 }
 0x1c1   : > { %v1581_v3 = vpop.permute.xlu1 %1580 }
 0x1c2   : > { %v1693_v62 = vmul.f32 %v4894_v5, %v1581_v3  ;;  %v1445_v58 = vadd.f32 %v4198_v45, %v1414_v16  ;;  %v1483_v11 = vpack.c.bf16 %v1415_v13, %v1414_v16  ;;  %v4909_v45 = vld [vmem:[#allocation20_spill] sm:$0xff] }
 0x1c4   : > { %v2085_v51 = vsel %vm2053_vm14, %v1693_v62, %v1857_v42  ;;  %2000 = vperm.xlu1 %2902, %v3073_v53   ;;  %2731 = vmatpush3.bf16.msra.mxu0 %v1483_v11  ;;  %v4329_v31 = vadd.f32 %v1445_v58, %v1415_v13  ;;  %v4918_v42 = vld [vmem:[#allocation70_spill] sm:$0xff]  ;;  %v1821_v11 = vpop.permute.xlu0 %1820 }
 0x1c5   : > { %v1585_v43 = vpop.permute.xlu1 %1584  ;;  %v2117_v15 = vmul.f32 %v2085_v51, %v524_v26  ;;  %v542_v26 = vcvt.s32.f32 %v510_v33  ;;  %v4919_v51 = vld [vmem:[#allocation13_spill] sm:$0xff] }
 0x1c6   : > { %v1694_v63 = vmul.f32 %v4894_v5, %v1585_v43 }
 0x1c7   : > { %v2148_v20 = vadd.f32 %v2147_v52, %v2117_v15  ;;  %v4911_v52 = vld [vmem:[#allocation19_spill] sm:$0xff] }
 0x1c8   : > { %2903 = vset.pattern.permute.xlu1 %v4823_v56  ;;  %v1921_v27 = vpop.permute.xlu0 %1920 }
 0x1c9   : > { %1099 = vperm.xlu1 %2903, %v4909_v45   ;;  %v1749_v60 = vpop.permute.xlu1 %1748  ;;  %v1711_v45 = vmul.f32 %v4894_v5, %v1653_v59 }
 0x1ca   : > { %v1858_v49 = vmul.f32 %v4895_v36, %v1749_v60  ;;  %v4920_v60 = vld [vmem:[#allocation12_spill] sm:$0xff] }
 0x1cc   : > { %v2086_v2 = vsel %vm2054_vm15, %v1694_v63, %v1858_v49 }
 0x1cd   : > { %1215 = vperm.xlu1 %2903, %v4910_v39   ;;  %v2118_v24 = vmul.f32 %v2086_v2, %v525_v46  ;;  %v4916_v46 = vld [vmem:[#allocation55_spill] sm:$0xff]  ;;  %v4376_v39 = vld [vmem:[%s3776_s24 + $0x10] sm:$0xff] }
 0x1ce   : > { %v1271_v4 = vpop.permute.xlu1 %1270  ;;  %v1140_v19 = vmul.f32 %v3774_v40, %v4916_v46  ;;  %v495_v33 = vunpack.c.1.s8 %v4376_v39  ;;  %v494_v48 = vunpack.c.0.s8 %v4376_v39 }
 0x1cf   : > { %v4337_v17 = vadd.f32 %v2148_v20, %v2118_v24  ;;  %v2186_v12 = vpack.c.bf16 %v2118_v24, %v2117_v15  ;;  %v1336_v23 = vadd.f32 %v3768_v35, %v1271_v4  ;;  %v1876_v15 = vmul.f32 %v4895_v36, %v1821_v11 }
 0x1d1   : > { %2904 = vset.pattern.permute.xlu1 %v4824_v8  ;;  %2753 = vmatpush3.bf16.msra.mxu1 %v2186_v12  ;;  %vm1368_vm0 = vcmp.gt.f32.partialorder %v1336_v23, 0.0  ;;  %v4921_v12 = vld [vmem:[#allocation41_spill] sm:$0xff] }
 0x1d2   : > { %1672 = vperm.xlu1 %2904, %v4911_v52   ;;  %v1400_v7 = vsel %vm1368_vm0, %v845_v1, %v1140_v19  ;;  %v4923_v1 = vld [vmem:[#allocation31_spill] sm:$0xff] }
 0x1d3   : > { %v1981_v32 = vpop.permute.xlu1 %1980  ;;  %v4360_v16 = vmul.f32 %v1400_v7, %v542_v26  ;;  %v830_v46 = vmul.f32 %v3789_v54, %v4923_v1  ;;  %v4924_v19 = vld [vmem:[#allocation59_spill] sm:$0xff]  ;;  %v4925_v7 = vld [vmem:[#allocation32_spill] sm:$0xff] }
 0x1d4   : > { %v2039_v20 = vadd.f32 %v4892_v41, %v1981_v32 }
 0x1d6   : > { %1832 = vperm.xlu1 %2904, %v4912_v10   ;;  %vm2071_vm3 = vcmp.gt.f32.partialorder %v2039_v20, 0.0  ;;  %v3074_v10 = vld [vmem:[%s4755_s4 + $0xf8] sm:$0xff] }
 0x1d7   : > { %v1985_v25 = vpop.permute.xlu1 %1984 }
 0x1d8   : > { %v2040_v53 = vadd.f32 %v4892_v41, %v1985_v25  ;;  %v653_v25 = vmul.f32 1.442695, %v3074_v10 }
 0x1da   : > { %1932 = vperm.xlu1 %2904, %v4914_v57   ;;  %vm2072_vm2 = vcmp.gt.f32.partialorder %v2040_v53, 0.0  ;;  %v4922_v57 = vld [vmem:[#allocation56_spill] sm:$0xff]  ;;  %3052 = vpow2.f32 %v653_v25  ;;  %v4926_v25 = vld [vmem:[#allocation71_spill] sm:$0xff] }
 0x1db   : > { %v1320_v9 = vadd.f32 %v3768_v35, %v4922_v57  ;;  %v4927_v57 = vld [vmem:[#allocation76_spill] sm:$0xff] }
 0x1dc   : > { %v1080_v6 = vpop.permute.xlu1 %1079 }
 0x1dd   : > { %v1141_v21 = vmul.f32 %v3774_v40, %v1080_v6  ;;  %v3075_v6 = vld [vmem:[%s4755_s4 + $0xf0] sm:$0xff]  ;;  %vm1352_vm5 = vcmp.gt.f32.partialorder %v1320_v9, 0.0 }
 0x1de   : > { %2905 = vset.pattern.permute.xlu1 %v4823_v56 }
 0x1df   : > { %v1401_v13 = vsel %vm1369_vm1, %v846_v22, %v1141_v21  ;;  %1014 = vperm.xlu1 %2905, %v4918_v42   ;;  %v526_v22 = vcvt.s32.f32 %v494_v48  ;;  %v829_v21 = vmul.f32 %v3789_v54, %v4925_v7  ;;  %v4931_v7 = vld [vmem:[#allocation7_spill] sm:$0xff] }
 0x1e0   : > { %v1196_v3 = vpop.permute.xlu1 %1195  ;;  %v4362_v62 = vmul.f32 %v1401_v13, %v543_v37 }
 0x1e1   : > { %v1321_v24 = vadd.f32 %v3768_v35, %v1196_v3 }
 0x1e2   : > { %v1492_v58 = vpack.c.bf16 %v4362_v62, %v4360_v16 }
 0x1e3   : > { %2906 = vset.pattern.permute.xlu1 %v4824_v8  ;;  %vm1353_vm4 = vcmp.gt.f32.partialorder %v1321_v24, 0.0 }
 0x1e4   : > { %1604 = vperm.xlu1 %2906, %v4919_v51   ;;  %2732 = vmatprep.subr.bf16.mxu0 %v1492_v58  ;;  %v1753_v58 = vpop.permute.xlu0 %1752  ;;  %v3053_v24 = vpop.eup %3052 }
 0x1e5   : > { %v1657_v34 = vpop.permute.xlu1 %1656  ;;  %v1859_v51 = vmul.f32 %v4895_v36, %v1753_v58 }
 0x1e6   : > { %v1712_v43 = vmul.f32 %v4894_v5, %v1657_v34 }
 0x1e8   : > { %1608 = vperm.xlu1 %2906, %v4920_v60   ;;  %v2104_v49 = vsel %vm2072_vm2, %v1712_v43, %v1876_v15 }
 0x1e9   : > { %v1817_v63 = vpop.permute.xlu1 %1816  ;;  %v4382_v32 = vmul.f32 %v2104_v49, %v543_v37  ;;  %v527_v37 = vcvt.s32.f32 %v495_v33 }
 0x1ea   : > { %v1875_v2 = vmul.f32 %v4895_v36, %v1817_v63  ;;  %v2024_v63 = vadd.f32 %v4892_v41, %v1921_v27 }
 0x1ec   : > { %v2103_v4 = vsel %vm2071_vm3, %v1711_v45, %v1875_v2  ;;  %1772 = vperm.xlu1 %2906, %v4921_v12   ;;  %vm2056_vm7 = vcmp.gt.f32.partialorder %v2024_v63, 0.0  ;;  %v4934_v63 = vld [vmem:[#allocation77_spill] sm:$0xff] }
 0x1ed   : > { %v1917_v52 = vpop.permute.xlu1 %1916  ;;  %v4380_v23 = vmul.f32 %v2103_v4, %v542_v26  ;;  %v1125_v26 = vmul.f32 %v3774_v40, %v4924_v19  ;;  %v513_v19 = vunpack.c.3.s8 %v4342_v61 }
 0x1ee   : > { %v2023_v42 = vadd.f32 %v4892_v41, %v1917_v52 }
 0x1ef   : > { %v2195_v47 = vpack.c.bf16 %v4382_v32, %v4380_v23  ;;  %v1385_v59 = vsel %vm1353_vm4, %v830_v46, %v1125_v26  ;;  %v512_v46 = vunpack.c.2.s8 %v4342_v61  ;;  %v4928_v26 = vld [vmem:[#allocation60_spill] sm:$0xff] }
 0x1f0   : > { %2907 = vset.pattern.permute.xlu1 %v4823_v56  ;;  %v1417_v11 = vmul.f32 %v1385_v59, %v527_v37  ;;  %vm2055_vm6 = vcmp.gt.f32.partialorder %v2023_v42, 0.0  ;;  %v545_v42 = vcvt.s32.f32 %v513_v19  ;;  %v497_v19 = vunpack.c.3.s8 %v4376_v39 }
 0x1f1   : > { %1300 = vperm.xlu1 %2907, %v3075_v6   ;;  %2754 = vmatprep.subr.bf16.mxu1 %v2195_v47  ;;  %v544_v59 = vcvt.s32.f32 %v512_v46 }
 0x1f2   : > { %v995_v29 = vpop.permute.xlu1 %994 }
 0x1f3   : > { %v1124_v13 = vmul.f32 %v3774_v40, %v995_v29  ;;  %v4930_v29 = vld [vmem:[#allocation48_spill] sm:$0xff] }
 0x1f5   : > { %v1384_v3 = vsel %vm1352_vm5, %v829_v21, %v1124_v13  ;;  %2908 = vset.pattern.permute.xlu1 %v4824_v8  ;;  %v1142_v21 = vmul.f32 %v3774_v40, %v4931_v7  ;;  %v4939_v7 = vld [vmem:[#allocation34_spill] sm:$0xff] }
 0x1f6   : > { %2004 = vperm.xlu1 %2908, %v3075_v6   ;;  %v1416_v53 = vmul.f32 %v1384_v3, %v526_v22  ;;  %v1339_v6 = vadd.f32 %v3768_v35, %v4928_v26  ;;  %v4932_v3 = vld [vmem:[#allocation47_spill] sm:$0xff]  ;;  %v496_v26 = vunpack.c.2.s8 %v4376_v39 }
 0x1f7   : > { %v1589_v34 = vpop.permute.xlu1 %1588  ;;  %v848_v58 = vmul.f32 %v3789_v54, %v4932_v3  ;;  %v529_v3 = vcvt.s32.f32 %v497_v19 }
 0x1f8   : > { %v1695_v43 = vmul.f32 %v4894_v5, %v1589_v34  ;;  %v1447_v15 = vadd.f32 %v4329_v31, %v1416_v53  ;;  %v1484_v20 = vpack.c.bf16 %v1417_v11, %v1416_v53  ;;  %vm1371_vm9 = vcmp.gt.f32.partialorder %v1339_v6, 0.0  ;;  %v1661_v53 = vpop.permute.xlu0 %1660 }
 0x1f9   : > { %v528_v39 = vcvt.s32.f32 %v496_v26 }
 0x1fa   : > { %v2087_v45 = vsel %vm2055_vm6, %v1695_v43, %v1859_v51  ;;  %2008 = vperm.xlu1 %2908, %v3074_v10   ;;  %2733 = vmatpush3.bf16.msra.mxu0 %v1484_v20  ;;  %v4409_v60 = vadd.f32 %v1447_v15, %v1417_v11  ;;  %v4933_v51 = vld [vmem:[#allocation68_spill] sm:$0xff] }
 0x1fb   : > { %v1593_v49 = vpop.permute.xlu1 %1592  ;;  %v2119_v2 = vmul.f32 %v2087_v45, %v526_v22  ;;  %v847_v22 = vmul.f32 %v3789_v54, %v4930_v29 }
 0x1fc   : > { %v1696_v31 = vmul.f32 %v4894_v5, %v1593_v49  ;;  %v1829_v49 = vpop.permute.xlu0 %1828 }
 0x1fd   : > { %v2150_v4 = vadd.f32 %v4337_v17, %v2119_v2 }
 0x1fe   : > { %2909 = vset.pattern.permute.xlu1 %v4823_v56 }
 0x1ff   : > { %814 = vperm.xlu1 %2909, %v3053_v24   ;;  %v1757_v12 = vpop.permute.xlu1 %1756 }
 0x200   : > { %v1860_v52 = vmul.f32 %v4895_v36, %v1757_v12 }
 0x202   : > { %v2088_v10 = vsel %vm2056_vm7, %v1696_v31, %v1860_v52  ;;  %v1713_v52 = vmul.f32 %v4894_v5, %v1661_v53 }
 0x203   : > { %1109 = vperm.xlu1 %2909, %v4926_v25   ;;  %v2120_v33 = vmul.f32 %v2088_v10, %v527_v37  ;;  %v4929_v37 = vld [vmem:[#allocation44_spill] sm:$0xff]  ;;  %v4935_v10 = vld [vmem:[#allocation15_spill] sm:$0xff] }
 0x204   : > { %v1281_v48 = vpop.permute.xlu1 %1280 }
 0x205   : > { %v4417_v27 = vadd.f32 %v2150_v4, %v2120_v33  ;;  %v2187_v47 = vpack.c.bf16 %v2120_v33, %v2119_v2  ;;  %v1338_v9 = vadd.f32 %v3768_v35, %v1281_v48  ;;  %v1878_v4 = vmul.f32 %v4895_v36, %v1829_v49 }
 0x207   : > { %1225 = vperm.xlu1 %2909, %v4927_v57   ;;  %2755 = vmatpush3.bf16.msra.mxu1 %v2187_v47  ;;  %vm1370_vm8 = vcmp.gt.f32.partialorder %v1338_v9, 0.0  ;;  %v2918_v47 = vld [vmem:[%s4752_s1 + $0x4] ss:$8 sps:$4 sm:$0xff]  }
 0x208   : > { %v1402_v11 = vsel %vm1370_vm8, %v847_v22, %v1142_v21  ;;  %1538 = vmatprep.mubr.bf16.mxu0 %v2918_v47  ;;  %v4938_v22 = vld [vmem:[#allocation49_spill] sm:$0xff]  ;;  %v832_v21 = vmul.f32 %v3789_v54, %v4939_v7 }
 0x209   : > { %v1989_v17 = vpop.permute.xlu1 %1988  ;;  %v4435_v43 = vmul.f32 %v1402_v11, %v544_v59  ;;  %v4941_v11 = vld [vmem:[#allocation35_spill] sm:$0xff] }
 0x20a   : > { %v2041_v31 = vadd.f32 %v4892_v41, %v1989_v17  ;;  %v4936_v17 = vld [vmem:[#allocation14_spill] sm:$0xff] }
 0x20b   : > { %2910 = vset.pattern.permute.xlu1 %v4824_v8 }
 0x20c   : > { %1680 = vperm.xlu1 %2910, %v3053_v24   ;;  %vm2073_vm11 = vcmp.gt.f32.partialorder %v2041_v31, 0.0 }
 0x20d   : > { %v1993_v1 = vpop.permute.xlu1 %1992 }
 0x20e   : > { %v2042_v2 = vadd.f32 %v4892_v41, %v1993_v1 }
 0x210   : > { %1840 = vperm.xlu1 %2910, %v4929_v37   ;;  %vm2074_vm10 = vcmp.gt.f32.partialorder %v2042_v2, 0.0  ;;  %v4937_v37 = vld [vmem:[#allocation61_spill] sm:$0xff] }
 0x211   : > { %v1322_v29 = vadd.f32 %v3768_v35, %v4937_v37 }
 0x212   : > { %v1090_v13 = vpop.permute.xlu1 %1089 }
 0x213   : > { %v1143_v61 = vmul.f32 %v3774_v40, %v1090_v13  ;;  %vm1354_vm13 = vcmp.gt.f32.partialorder %v1322_v29, 0.0  ;;  %v4491_v29 = vld [vmem:[%s3776_s24 + $0x38] sm:$0xff] }
 0x214   : > { %1940 = vperm.xlu1 %2910, %v4933_v51  }
 0x215   : > { %v1403_v34 = vsel %vm1371_vm9, %v848_v58, %v1143_v61  ;;  %v831_v61 = vmul.f32 %v3789_v54, %v4941_v11 }
 0x216   : > { %v1206_v15 = vpop.permute.xlu1 %1205  ;;  %v4437_v20 = vmul.f32 %v1403_v34, %v545_v42 }
 0x217   : > { %v1323_v57 = vadd.f32 %v3768_v35, %v1206_v15 }
 0x218   : > { %2911 = vset.pattern.permute.xlu1 %v4823_v56  ;;  %v1493_v45 = vpack.c.bf16 %v4437_v20, %v4435_v43 }
 0x219   : > { %1024 = vperm.xlu1 %2911, %v4934_v63   ;;  %vm1355_vm12 = vcmp.gt.f32.partialorder %v1323_v57, 0.0 }
 0x21a   : > { %2734 = vmatprep.subr.bf16.mxu0 %v1493_v45 }
 0x21b   : > { %v1665_v24 = vpop.permute.xlu1 %1664 }
 0x21c   : > { %v1714_v12 = vmul.f32 %v4894_v5, %v1665_v24 }
 0x21d   : > { %2913 = vset.pattern.permute.xlu1 %v4824_v8 }
 0x21e   : > { %1612 = vperm.xlu1 %2913, %v4935_v10   ;;  %v2106_v33 = vsel %vm2074_vm10, %v1714_v12, %v1878_v4 }
 0x21f   : > { %v1825_v25 = vpop.permute.xlu1 %1824  ;;  %v4458_v46 = vmul.f32 %v2106_v33, %v545_v42  ;;  %v1929_v42 = vpop.permute.xlu0 %1928 }
 0x220   : > { %v1877_v48 = vmul.f32 %v4895_v36, %v1825_v25 }
 0x222   : > { %v2105_v9 = vsel %vm2073_vm11, %v1713_v52, %v1877_v48  ;;  %1616 = vperm.xlu1 %2913, %v4936_v17   ;;  %v2921_v52 = vld [vmem:[%s4752_s1 + $0x14] ss:$8 sps:$4 sm:$0xff]   ;;  %v2026_v48 = vadd.f32 %v4892_v41, %v1929_v42  ;;  %v515_v42 = vunpack.c.1.s8 %v4491_v29 }
 0x223   : > { %v1925_v8 = vpop.permute.xlu1 %1924  ;;  %v4456_v1 = vmul.f32 %v2105_v9, %v544_v59  ;;  %v4940_v59 = vld [vmem:[#allocation18_spill] sm:$0xff]  ;;  %v1761_v49 = vpop.permute.xlu0 %1760  ;;  %2241 = vmatprep.mubr.bf16.mxu1 %v2921_v52 }
 0x224   : > { %v1127_v13 = vmul.f32 %v3774_v40, %v4940_v59  ;;  %v2025_v34 = vadd.f32 %v4892_v41, %v1925_v8  ;;  %v1861_v24 = vmul.f32 %v4895_v36, %v1761_v49  ;;  %vm2058_vm15 = vcmp.gt.f32.partialorder %v2026_v48, 0.0  ;;  %v2306_v59 = vld [vmem:[%s4757_s6] sm:$0xff] }
 0x225   : > { %v2196_v6 = vpack.c.bf16 %v4458_v46, %v4456_v1 }
 0x226   : > { %1780 = vperm.xlu1 %2913, %v4938_v22   ;;  %v1387_v51 = vsel %vm1355_vm12, %v832_v21, %v1127_v13  ;;  %vm2057_vm14 = vcmp.gt.f32.partialorder %v2025_v34, 0.0  ;;  %v2289_v22 = vld [vmem:[%s4756_s5 + $0x8] sm:$0xff]  ;;  %v514_v13 = vunpack.c.0.s8 %v4491_v29 }
 0x227   : > { %2756 = vmatprep.subr.bf16.mxu1 %v2196_v6  ;;  %v1419_v45 = vmul.f32 %v1387_v51, %v529_v3  ;;  %2297 = vperm.xlu0 %2915, %v2289_v22  }
 0x228   : > { %v1005_v58 = vpop.permute.xlu1 %1004  ;;  %v546_v34 = vcvt.s32.f32 %v514_v13 }
 0x229   : > { %v1126_v53 = vmul.f32 %v3774_v40, %v1005_v58 }
 0x22a   : > { %2914 = vset.pattern.permute.xlu1 %v4823_v56 }
 0x22b   : > { %v1386_v15 = vsel %vm1354_vm13, %v831_v61, %v1126_v53  ;;  %v4944_v61 = vld [vmem:[#allocation64_spill] sm:$0xff] }
 0x22c   : > { %v1418_v63 = vmul.f32 %v1386_v15, %v528_v39  ;;  %v1144_v51 = vmul.f32 %v3774_v40, %v4944_v61  ;;  %v2307_v53 = vld [vmem:[%s4757_s6 + $0x8] sm:$0xff] }
 0x22d   : > { %v1597_v2 = vpop.permute.xlu1 %1596 }
 0x22e   : > { %v1697_v4 = vmul.f32 %v4894_v5, %v1597_v2  ;;  %v1449_v12 = vadd.f32 %v4409_v60, %v1418_v63  ;;  %v1485_v31 = vpack.c.bf16 %v1419_v45, %v1418_v63  ;;  %v4945_v63 = vld [vmem:[#allocation50_spill] sm:$0xff] }
 0x22f   : > { %v850_v49 = vmul.f32 %v3789_v54, %v4945_v63 }
 0x230   : > { %v2089_v56 = vsel %vm2057_vm14, %v1697_v4, %v1861_v24  ;;  %2735 = vmatpush3.bf16.msra.mxu0 %v1485_v31  ;;  %v4482_v10 = vadd.f32 %v1449_v12, %v1419_v45  ;;  %v547_v45 = vcvt.s32.f32 %v515_v42 }
 0x231   : > { %v1601_v25 = vpop.permute.xlu1 %1600  ;;  %v2121_v33 = vmul.f32 %v2089_v56, %v528_v39  ;;  %v4943_v39 = vld [vmem:[#allocation51_spill] sm:$0xff]  ;;  %v1669_v56 = vpop.permute.xlu0 %1668 }
 0x232   : > { %v1698_v60 = vmul.f32 %v4894_v5, %v1601_v25  ;;  %v849_v11 = vmul.f32 %v3789_v54, %v4943_v39 }
 0x233   : > { %v2152_v47 = vadd.f32 %v4417_v27, %v2121_v33  ;;  %v2288_v27 = vld [vmem:[%s4756_s5] sm:$0xff] }
 0x234   : > { %2292 = vperm.xlu1 %2914, %v2288_v27   ;;  %v4530_v27 = vld [vmem:[%s3776_s24 + $0x18] sm:$0xff]  ;;  %s3082_s24 = scalar_lea.vmem %s3081_s23, 4096 }
 0x235   : > { %v1765_v57 = vpop.permute.xlu1 %1764  ;;  %v498_v42 = vunpack.c.0.s8 %v4530_v27  ;;  %p3084_p4 = scmp.lt.s32.totalorder %s3082_s24, %s3076_s17 }
 0x236   : > { %v1862_v9 = vmul.f32 %v4895_v36, %v1765_v57  ;;  %v1837_v57 = vpop.permute.xlu0 %1836 }
 0x237   : > { %v530_v63 = vcvt.s32.f32 %v498_v42  ;;  %p3085_p5 = por %p3084_p4, %p3083_p3 }
 0x238   : > { %v2090_v17 = vsel %vm2058_vm15, %v1698_v60, %v1862_v9  ;;  %2310 = vperm.xlu1 %2914, %v2306_v59   ;;  %v1880_v9 = vmul.f32 %v4895_v36, %v1837_v57 }
 0x239   : > { %v2122_v8 = vmul.f32 %v2090_v17, %v529_v3  ;;  %v4942_v3 = vld [vmem:[#allocation62_spill] sm:$0xff]  ;;  %p3086_p7 = pnand %p3085_p5, %p3079_p2 }
 0x23a   : > { %v1291_v19 = vpop.permute.xlu1 %1290  ;;  %v1341_v58 = vadd.f32 %v3768_v35, %v4942_v3 }
 0x23b   : > { %v4488_v26 = vadd.f32 %v2152_v47, %v2122_v8  ;;  %v2188_v6 = vpack.c.bf16 %v2122_v8, %v2121_v33  ;;  %v1340_v7 = vadd.f32 %v3768_v35, %v1291_v19  ;;  %v1715_v8 = vmul.f32 %v4894_v5, %v1669_v56 }
 0x23c   : > { %vm1373_vm1 = vcmp.gt.f32.partialorder %v1341_v58, 0.0  ;;  %2315 = vperm.xlu1 %2914, %v2307_v53   ;;  %v4946_v58 = vld [vmem:[#allocation65_spill] sm:$0xff] }
 0x23d   : > { %2757 = vmatpush3.bf16.msra.mxu1 %v2188_v6  ;;  %vm1372_vm0 = vcmp.gt.f32.partialorder %v1340_v7, 0.0  ;;  %v1324_v39 = vadd.f32 %v3768_v35, %v4946_v58 }
 0x23e   : > { %v1404_v2 = vsel %vm1372_vm0, %v849_v11, %v1144_v51  ;;  %v4947_v11 = vld [vmem:[#allocation36_spill] sm:$0xff]  ;;  %v4948_v51 = vld [vmem:[#allocation66_spill] sm:$0xff] }
 0x23f   : > { %v1997_v37 = vpop.permute.xlu1 %1996  ;;  %v4517_v12 = vmul.f32 %v1404_v2, %v546_v34  ;;  %v834_v61 = vmul.f32 %v3789_v54, %v4947_v11  ;;  %v1129_v53 = vmul.f32 %v3774_v40, %v4948_v51  ;;  %vm1356_vm5 = vcmp.gt.f32.partialorder %v1324_v39, 0.0 }
 0x240   : > { %v2043_v60 = vadd.f32 %v4892_v41, %v1997_v37  ;;  %v499_v37 = vunpack.c.1.s8 %v4530_v27 }
 0x242   : > { %vm2075_vm3 = vcmp.gt.f32.partialorder %v2043_v60, 0.0 }
 0x243   : > { %v2001_v21 = vpop.permute.xlu1 %2000 }
 0x244   : > { %v2044_v33 = vadd.f32 %v4892_v41, %v2001_v21 }
 0x246   : > { %vm2076_vm2 = vcmp.gt.f32.partialorder %v2044_v33, 0.0 }
 0x248   : > { %v1100_v15 = vpop.permute.xlu1 %1099 }
 0x249   : > { %v1145_v24 = vmul.f32 %v3774_v40, %v1100_v15  ;;  %v531_v15 = vcvt.s32.f32 %v499_v37 }
 0x24b   : > { %v1405_v4 = vsel %vm1373_vm1, %v850_v49, %v1145_v24  ;;  %v4949_v49 = vld [vmem:[#allocation37_spill] sm:$0xff] }
 0x24c   : > { %v1216_v31 = vpop.permute.xlu1 %1215  ;;  %v4519_v52 = vmul.f32 %v1405_v4, %v547_v45  ;;  %v833_v2 = vmul.f32 %v3789_v54, %v4949_v49 }
 0x24d   : > { %v1325_v22 = vadd.f32 %v3768_v35, %v1216_v31 }
 0x24e   : > { %v1494_v25 = vpack.c.bf16 %v4519_v52, %v4517_v12 }
 0x24f   : > { %vm1357_vm4 = vcmp.gt.f32.partialorder %v1325_v22, 0.0 }
 0x250   : > { %2736 = vmatprep.subr.bf16.mxu0 %v1494_v25  ;;  %v1389_v24 = vsel %vm1357_vm4, %v834_v61, %v1129_v53  ;;  %v4950_v53 = vld [vmem:[#allocation16_spill] sm:$0xff]  ;;  %vm2363_vm4 = vcmask 130048  }
 0x251   : > { %v1673_v48 = vpop.permute.xlu1 %1672  ;;  %v1421_v25 = vmul.f32 %v1389_v24, %v531_v15  ;;  %v516_v24 = vunpack.c.2.s8 %v4491_v29 }
 0x252   : > { %v1716_v47 = vmul.f32 %v4894_v5, %v1673_v48 }
 0x254   : > { %v2108_v19 = vsel %vm2076_vm2, %v1716_v47, %v1880_v9 }
 0x255   : > { %v1833_v17 = vpop.permute.xlu1 %1832  ;;  %v4535_v13 = vmul.f32 %v2108_v19, %v547_v45 }
 0x256   : > { %v1879_v6 = vmul.f32 %v4895_v36, %v1833_v17 }
 0x258   : > { %v2107_v7 = vsel %vm2075_vm3, %v1715_v8, %v1879_v6 }
 0x259   : > { %v1933_v21 = vpop.permute.xlu1 %1932  ;;  %v4533_v59 = vmul.f32 %v2107_v7, %v546_v34  ;;  %v1937_v34 = vpop.permute.xlu0 %1936 }
 0x25a   : > { %v2027_v31 = vadd.f32 %v4892_v41, %v1933_v21  ;;  %v2028_v7 = vadd.f32 %v4892_v41, %v1937_v34  ;;  %v4951_v34 = vld [vmem:[#allocation24_spill] sm:$0xff] }
 0x25b   : > { %v2197_v3 = vpack.c.bf16 %v4535_v13, %v4533_v59 }
 0x25c   : > { %vm2059_vm6 = vcmp.gt.f32.partialorder %v2027_v31, 0.0  ;;  %vm2060_vm7 = vcmp.gt.f32.partialorder %v2028_v7, 0.0  ;;  %v4952_v31 = vld [vmem:[#allocation67_spill] sm:$0xff] }
 0x25d   : > { %2758 = vmatprep.subr.bf16.mxu1 %v2197_v3  ;;  %v1769_v48 = vpop.permute.xlu0 %1768 }
 0x25e   : > { %v1015_v45 = vpop.permute.xlu1 %1014  ;;  %v1863_v57 = vmul.f32 %v4895_v36, %v1769_v48 }
 0x25f   : > { %v1128_v4 = vmul.f32 %v3774_v40, %v1015_v45  ;;  %v851_v45 = vmul.f32 %v3789_v54, %v4950_v53 }
 0x261   : > { %v1388_v56 = vsel %vm1356_vm5, %v833_v2, %v1128_v4  ;;  %v517_v4 = vunpack.c.3.s8 %v4491_v29 }
 0x262   : > { %v1420_v33 = vmul.f32 %v1388_v56, %v530_v63  ;;  %v1343_v56 = vadd.f32 %v3768_v35, %v4952_v31  ;;  %v4954_v31 = vld [vmem:[#allocation39_spill] sm:$0xff] }
 0x263   : > { %v1605_v47 = vpop.permute.xlu1 %1604  ;;  %v549_v48 = vcvt.s32.f32 %v517_v4 }
 0x264   : > { %v1699_v60 = vmul.f32 %v4894_v5, %v1605_v47  ;;  %v1451_v9 = vadd.f32 %v4482_v10, %v1420_v33  ;;  %v1486_v17 = vpack.c.bf16 %v1421_v25, %v1420_v33  ;;  %vm1375_vm9 = vcmp.gt.f32.partialorder %v1343_v56, 0.0 }
 0x265   : > { %v836_v56 = vmul.f32 %v3789_v54, %v4954_v31 }
 0x266   : > { %v2091_v8 = vsel %vm2059_vm6, %v1699_v60, %v1863_v57  ;;  %2737 = vmatpush3.bf16.msra.mxu0 %v1486_v17  ;;  %v4554_v19 = vadd.f32 %v1451_v9, %v1421_v25  ;;  %v548_v25 = vcvt.s32.f32 %v516_v24 }
 0x267   : > { %v1609_v6 = vpop.permute.xlu1 %1608  ;;  %v2123_v22 = vmul.f32 %v2091_v8, %v530_v63 }
 0x268   : > { %v1700_v42 = vmul.f32 %v4894_v5, %v1609_v6  ;;  %v1677_v6 = vpop.permute.xlu0 %1676 }
 0x269   : > { %v2154_v21 = vadd.f32 %v4488_v26, %v2123_v22  ;;  %v1146_v26 = vmul.f32 %v3774_v40, %v4951_v34 }
 0x26b   : > { %v1773_v37 = vpop.permute.xlu1 %1772 }
 0x26c   : > { %v1864_v3 = vmul.f32 %v4895_v36, %v1773_v37  ;;  %v1845_v37 = vpop.permute.xlu0 %1844 }
 0x26e   : > { %v2092_v58 = vsel %vm2060_vm7, %v1700_v42, %v1864_v3  ;;  %v1882_v3 = vmul.f32 %v4895_v36, %v1845_v37 }
 0x26f   : > { %v2124_v10 = vmul.f32 %v2092_v58, %v531_v15 }
 0x270   : > { %v1301_v39 = vpop.permute.xlu1 %1300 }
 0x271   : > { %v1342_v11 = vadd.f32 %v3768_v35, %v1301_v39  ;;  %v4561_v61 = vadd.f32 %v2154_v21, %v2124_v10  ;;  %v2189_v51 = vpack.c.bf16 %v2124_v10, %v2123_v22  ;;  %v1717_v10 = vmul.f32 %v4894_v5, %v1677_v6 }
 0x273   : > { %vm1374_vm8 = vcmp.gt.f32.partialorder %v1342_v11, 0.0  ;;  %2759 = vmatpush3.bf16.msra.mxu1 %v2189_v51 }
 0x274   : > { %v1406_v63 = vsel %vm1374_vm8, %v851_v45, %v1146_v26 }
 0x275   : > { %v2005_v49 = vpop.permute.xlu1 %2004  ;;  %v4573_v9 = vmul.f32 %v1406_v63, %v548_v25  ;;  %v501_v63 = vunpack.c.3.s8 %v4530_v27 }
 0x276   : > { %v2045_v42 = vadd.f32 %v4892_v41, %v2005_v49  ;;  %v500_v49 = vunpack.c.2.s8 %v4530_v27 }
 0x278   : > { %vm2077_vm11 = vcmp.gt.f32.partialorder %v2045_v42, 0.0 }
 0x279   : > { %v2009_v2 = vpop.permute.xlu1 %2008 }
 0x27a   : > { %v2046_v22 = vadd.f32 %v4892_v41, %v2009_v2  ;;  %v1945_v2 = vpop.permute.xlu0 %1944 }
 0x27c   : > { %vm2078_vm10 = vcmp.gt.f32.partialorder %v2046_v22, 0.0 }
 0x27e   : > { %v815_v15 = vpop.permute.xlu1 %814 }
 0x27f   : > { %v852_v47 = vmul.f32 %v3789_v54, %v815_v15  ;;  %v4953_v15 = vld [vmem:[#allocation72_spill] sm:$0xff] }
 0x280   : > { %v1326_v4 = vadd.f32 %v3768_v35, %v4953_v15 }
 0x282   : > { %v1110_v33 = vpop.permute.xlu1 %1109  ;;  %vm1358_vm13 = vcmp.gt.f32.partialorder %v1326_v4, 0.0  ;;  %v4959_v4 = vld [vmem:[#allocation57_spill] sm:$0xff] }
 0x283   : > { %v1147_v57 = vmul.f32 %v3774_v40, %v1110_v33  ;;  %v4955_v33 = vld [vmem:[#allocation73_spill] sm:$0xff] }
 0x285   : > { %v1407_v60 = vsel %vm1375_vm9, %v852_v47, %v1147_v57  ;;  %v532_v57 = vcvt.s32.f32 %v500_v49 }
 0x286   : > { %v1226_v17 = vpop.permute.xlu1 %1225  ;;  %v4575_v8 = vmul.f32 %v1407_v60, %v549_v48  ;;  %v4956_v60 = vld [vmem:[#allocation40_spill] sm:$0xff] }
 0x287   : > { %v1327_v51 = vadd.f32 %v3768_v35, %v1226_v17  ;;  %v835_v27 = vmul.f32 %v3789_v54, %v4956_v60  ;;  %v2916_v54 = vld [vmem:[%s4752_s1] ss:$8 sps:$4 sm:$0xff]  }
 0x288   : > { %v1495_v29 = vpack.c.bf16 %v4575_v8, %v4573_v9 }
 0x289   : > { %vm1359_vm12 = vcmp.gt.f32.partialorder %v1327_v51, 0.0 }
 0x28a   : > { %2738 = vmatprep.subr.bf16.mxu0 %v1495_v29  ;;  %v1777_v29 = vpop.permute.xlu0 %1776 }
 0x28b   : > { %v1681_v7 = vpop.permute.xlu1 %1680  ;;  %v1865_v42 = vmul.f32 %v4895_v36, %v1777_v29  ;;  %v2919_v29 = vld [vmem:[%s4752_s1 + $0x10] ss:$8 sps:$4 sm:$0xff]  }
 0x28c   : > { %v1718_v21 = vmul.f32 %v4894_v5, %v1681_v7 }
 0x28e   : > { %v2110_v39 = vsel %vm2078_vm10, %v1718_v21, %v1882_v3 }
 0x28f   : > { %v1841_v58 = vpop.permute.xlu1 %1840  ;;  %v4588_v26 = vmul.f32 %v2110_v39, %v549_v48  ;;  %v533_v48 = vcvt.s32.f32 %v501_v63  ;;  %v2030_v63 = vadd.f32 %v4892_v41, %v1945_v2 }
 0x290   : > { %v1881_v11 = vmul.f32 %v4895_v36, %v1841_v58 }
 0x291   : > { %vm2062_vm15 = vcmp.gt.f32.partialorder %v2030_v63, 0.0 }
 0x292   : > { %v2109_v53 = vsel %vm2077_vm11, %v1717_v10, %v1881_v11 }
 0x293   : > { %v1941_v45 = vpop.permute.xlu1 %1940  ;;  %v4586_v34 = vmul.f32 %v2109_v53, %v548_v25  ;;  %v1131_v25 = vmul.f32 %v3774_v40, %v4955_v33  ;;  %v4957_v53 = vld [vmem:[#allocation52_spill] sm:$0xff] }
 0x294   : > { %v2029_v35 = vadd.f32 %v4892_v41, %v1941_v45 }
 0x295   : > { %v2198_v24 = vpack.c.bf16 %v4588_v26, %v4586_v34  ;;  %v1391_v17 = vsel %vm1359_vm12, %v836_v56, %v1131_v25  ;;  %v4960_v25 = vld [vmem:[#allocation58_spill] sm:$0xff] }
 0x296   : > { %v1423_v7 = vmul.f32 %v1391_v17, %v533_v48  ;;  %vm2061_vm14 = vcmp.gt.f32.partialorder %v2029_v35, 0.0 }
 0x297   : > { %2760 = vmatprep.subr.bf16.mxu1 %v2198_v24  ;;  %v4958_v24 = vld [vmem:[#allocation53_spill] sm:$0xff] }
 0x298   : > { %v1025_v47 = vpop.permute.xlu1 %1024 }
 0x299   : > { %v1130_v6 = vmul.f32 %v3774_v40, %v1025_v47 }
 0x29b   : > { %v1390_v22 = vsel %vm1358_vm13, %v835_v27, %v1130_v6  ;;  %v4961_v27 = vld [vmem:[#allocation74_spill] sm:$0xff]  ;;  %v4962_v6 = vld [vmem:[#allocation75_spill] sm:$0xff] }
 0x29c   : > { %v1422_v21 = vmul.f32 %v1390_v22, %v532_v57 }
 0x29d   : > { %v1613_v37 = vpop.permute.xlu1 %1612 }
 0x29e   : > { %v1701_v3 = vmul.f32 %v4894_v5, %v1613_v37  ;;  %v1453_v58 = vadd.f32 %v4554_v19, %v1422_v21  ;;  %v1487_v10 = vpack.c.bf16 %v1423_v7, %v1422_v21 }
 0x2a0   : > { %v2093_v40 = vsel %vm2061_vm14, %v1701_v3, %v1865_v42  ;;  %v1454_v39 = vadd.f32 %v1453_v58, %v1423_v7  ;;  %2739 = vmatpush3.bf16.msra.mxu0 %v1487_v10 }
 0x2a1   : > { %v1617_v11 = vpop.permute.xlu1 %1616  ;;  %v2125_v51 = vmul.f32 %v2093_v40, %v532_v57 }
 0x2a2   : > { %v1455_v45 = vadd.f32 %v1454_v39, %v4957_v53  ;;  %v1702_v56 = vmul.f32 %v4894_v5, %v1617_v11 }
 0x2a3   : > { %1539 = vmatmul.mubr.bf16.vlgmr.msra.gmra.mrb[0].mxu0 %v2916_v54  ;;  %v2156_v49 = vadd.f32 %v4561_v61, %v2125_v51 }
 0x2a4   : > { %v1456_v19 = vadd.f32 %v1455_v45, %v4958_v24 }
 0x2a5   : > { %v1781_v15 = vpop.permute.xlu1 %1780 }
 0x2a6   : > { %v1457_v31 = vadd.f32 %v1456_v19, %v4959_v4  ;;  %v1866_v33 = vmul.f32 %v4895_v36, %v1781_v15  ;;  %v4963_v36 = vld [vmem:[#allocation9_spill] sm:$0xff]  ;;  %v554_v19 = vld [vmem:[%s431_s28] sm:$0xff] }
 0x2a8   : > { %v1458_v47 = vadd.f32 %v1457_v31, %v4960_v25  ;;  %v2094_v57 = vsel %vm2062_vm15, %v1702_v56, %v1866_v33  ;;  %v555_v31 = vld [vmem:[%s431_s28 + $0x8] sm:$0xff] }
 0x2a9   : > { %v2126_v60 = vmul.f32 %v2094_v57, %v533_v48 }
 0x2aa   : > { %v1459_v17 = vadd.f32 %v1458_v47, %v4961_v27 }
 0x2ab   : > { %v2157_v41 = vadd.f32 %v2156_v49, %v2126_v60  ;;  %v2190_v2 = vpack.c.bf16 %v2126_v60, %v2125_v51 }
 0x2ac   : > { %v1460_v61 = vadd.f32 %v1459_v17, %v4962_v6 }
 0x2ad   : > { %v2158_v35 = vadd.f32 %v2157_v41, %v4152_v18  ;;  %2761 = vmatpush3.bf16.msra.mxu1 %v2190_v2  ;;  %v556_v2 = vld [vmem:[%s431_s28 + $0x10] sm:$0xff] }
 0x2ae   : > { %v1461_v5 = vadd.f32 %v1460_v61, %v4280_v28 }
 0x2af   : > { %v2159_v22 = vadd.f32 %v2158_v35, %v4963_v36 }
 0x2b0   : > { %v1462_v7 = vadd.f32 %v1461_v5, %v4282_v0  ;;  %2242 = vmatmul.mubr.bf16.vlgmr.msra.gmra.mrb[0].mxu1 %v2919_v29  ;;  %v557_v29 = vld [vmem:[%s431_s28 + $0x18] sm:$0xff] }
 0x2b1   : > { %v2160_v48 = vadd.f32 %v2159_v22, %v4210_v50 }
 0x2b2   : > { %v1463_v21 = vadd.f32 %v1462_v7, %v4360_v16 }
 0x2b3   : > { %v2161_v37 = vadd.f32 %v2160_v48, %v4213_v38 }
 0x2b4   : > { %v1464_v42 = vadd.f32 %v1463_v21, %v4362_v62 }
 0x2b5   : > { %v2162_v3 = vadd.f32 %v2161_v37, %v4256_v30 }
 0x2b6   : > { %v1465_v18 = vadd.f32 %v1464_v42, %v4435_v43 }
 0x2b7   : > { %v2163_v58 = vadd.f32 %v2162_v3, %v4259_v14 }
 0x2b8   : > { %v1466_v28 = vadd.f32 %v1465_v18, %v4437_v20 }
 0x2b9   : > { %v2164_v10 = vadd.f32 %v2163_v58, %v4300_v55 }
 0x2ba   : > { %v1467_v0 = vadd.f32 %v1466_v28, %v4517_v12 }
 0x2bb   : > { %v2165_v50 = vadd.f32 %v2164_v10, %v4302_v44 }
 0x2bc   : > { %v1468_v16 = vadd.f32 %v1467_v0, %v4519_v52 }
 0x2bd   : > { %v2166_v38 = vadd.f32 %v2165_v50, %v4380_v23 }
 0x2be   : > { %v1469_v62 = vadd.f32 %v1468_v16, %v4573_v9 }
 0x2bf   : > { %v2167_v30 = vadd.f32 %v2166_v38, %v4382_v32 }
 0x2c0   : > { %v1470_v43 = vadd.f32 %v1469_v62, %v4575_v8 }
 0x2c1   : > { %v2168_v14 = vadd.f32 %v2167_v30, %v4456_v1 }
 0x2c2   : > { %v1471_v23 = vrot.slane %v1470_v43, 4 }
 0x2c3   : > { %v2169_v20 = vadd.f32 %v2168_v14, %v4458_v46 }
 0x2c4   : > { %v1472_v54 = vadd.f32 %v1471_v23, %v1470_v43 }
 0x2c5   : > { %v2170_v55 = vadd.f32 %v2169_v20, %v4533_v59 }
 0x2c6   : > { %v1473_v9 = vrot.slane %v1472_v54, 2 }
 0x2c7   : > { %v2171_v12 = vadd.f32 %v2170_v55, %v4535_v13 }
 0x2c8   : > { %v1474_v40 = vadd.f32 %v1473_v9, %v1472_v54 }
 0x2c9   : > { %v2172_v44 = vadd.f32 %v2171_v12, %v4586_v34 }
 0x2ca   : > { %v1475_v39 = vrot.slane %v1474_v40, 1 }
 0x2cb   : > { %v2173_v52 = vadd.f32 %v2172_v44, %v4588_v26 }
 0x2cc   : > { %v1476_v11 = vadd.f32 %v1475_v39, %v1474_v40 }
 0x2cd   : > { %v2174_v32 = vrot.slane %v2173_v52, 4 }
 0x2ce   : > { %vm1477_vm0 = vcmp.eq.f32.partialorder %v1476_v11, 0.0 }
 0x2cf   : > { %v2175_v8 = vadd.f32 %v2174_v32, %v2173_v52  ;;  %v1478_v59 = vsel %vm1477_vm0, 1.0, %v1476_v11  ;;  %v2298_v11 = vpop.permute.xlu0 %2297 }
 0x2d0   : > { %3054 = vrcp.f32 %v1478_v59 }
 0x2d1   : > { %v2176_v1 = vrot.slane %v2175_v8, 2 }
 0x2d3   : > { %v2177_v46 = vadd.f32 %v2176_v1, %v2175_v8  ;;  %v2293_v8 = vpop.permute.xlu1 %2292 }
 0x2d5   : > { %v2178_v51 = vrot.slane %v2177_v46, 1 }
 0x2d7   : > { %v2179_v13 = vadd.f32 %v2178_v51, %v2177_v46  ;;  %v2311_v1 = vpop.permute.xlu1 %2310 }
 0x2d9   : > { %vm2180_vm1 = vcmp.eq.f32.partialorder %v2179_v13, 0.0 }
 0x2da   : > { %v3055_v63 = vpop.eup %3054  ;;  %v2181_v24 = vsel %vm2180_vm1, 1.0, %v2179_v13 }
 0x2db   : > { %3056 = vrcp.f32 %v2181_v24  ;;  %v2323_v24 = vld [vmem:[%s4758_s7 + $0x8] sm:$0xff] }
 0x2e5   : > { %v3057_v17 = vpop.eup %3056 }
 0x376   : > { %v2740_v34 = vpop.f32.mrb[0].mxu0 }
 0x377   : > { %v2741_v26 = vpop.f32.mrb[1].mxu0 }
 0x378   : > { %v2742_v53 = vadd.f32 %v2741_v26, %v2740_v34  ;;  %v2743_v45 = vpop.f32.mrb[2].mxu0 }
 0x379   : > { %v2744_v49 = vpop.f32.mrb[3].mxu0 }
 0x37a   : > { %v1547_v15 = vmul.f32 %v3055_v63, %v2742_v53  ;;  %v2745_v4 = vadd.f32 %v2744_v49, %v2743_v45  ;;  %v2316_v53 = vpop.permute.xlu1 %2315  ;;  %v2322_v49 = vld [vmem:[%s4758_s7] sm:$0xff] }
 0x37c   : > { %v1548_v56 = vmul.f32 %v3055_v63, %v2745_v4  ;;  %v1551_v33 = vsel %vm1477_vm0, %v554_v19, %v1547_v15  ;;  %v2814_v19 = vpack.c.bf16 %v2323_v24, %v2322_v49 }
 0x37e   : > { %v1552_v25 = vsel %vm1477_vm0, %v555_v31, %v1548_v56  ;;  %2815 = vmatprep.subr.bf16.mxu0 %v2814_v19  ;;  %2818 = vmatprep.subr.bf16.mxu1 %v2814_v19 }
 0x37f   : > { %2817 = vmatpush3.bf16.msra.mxu0 %v2814_v19  ;;  %2819 = vmatpush3.bf16.msra.mxu1 %v2814_v19 }
 0x383   : > { %v2762_v47 = vpop.f32.mrb[0].mxu1 }
 0x384   : > { %v2763_v57 = vpop.f32.mrb[1].mxu1 }
 0x385   : > { %v2764_v60 = vadd.f32 %v2763_v57, %v2762_v47  ;;  %v2765_v27 = vpop.f32.mrb[2].mxu1 }
 0x386   : > { %v2766_v41 = vpop.f32.mrb[3].mxu1 }
 0x387   : > { %v2250_v6 = vmul.f32 %v3057_v17, %v2764_v60  ;;  %v2767_v61 = vadd.f32 %v2766_v41, %v2765_v27 }
 0x389   : > { %v2251_v35 = vmul.f32 %v3057_v17, %v2767_v61  ;;  %v2254_v5 = vsel %vm2180_vm1, %v556_v2, %v2250_v6 }
 0x38a   : > { %v2256_v36 = vadd.f32 %v2254_v5, %v1551_v33  ;;  %v2701_v5 = vld [vmem:[%s4759_s8] ss:$0 sm:$0xff] }
 0x38b   : > { %v2255_v22 = vsel %vm2180_vm1, %v557_v29, %v2251_v35 }
 0x38c   : > { %v2257_v7 = vadd.f32 %v2255_v22, %v1552_v25  ;;  %v2258_v21 = vmul.f32 0.5, %v2256_v36 }
 0x38e   : > { %v2259_v48 = vmul.f32 0.5, %v2257_v7 }
 0x390   : > { %v2260_v37 = vadd.f32 %v2259_v48, %v2258_v21 }
 0x392   : > { %v2261_v42 = vrot.slane %v2260_v37, 4 }
 0x394   : > { %v2262_v3 = vadd.f32 %v2261_v42, %v2260_v37 }
 0x396   : > { %v2263_v18 = vrot.slane %v2262_v3, 2 }
 0x398   : > { %v2264_v58 = vadd.f32 %v2263_v18, %v2262_v3 }
 0x39a   : > { %v2265_v28 = vrot.slane %v2264_v58, 1 }
 0x39c   : > { %v2266_v10 = vadd.f32 %v2265_v28, %v2264_v58 }
 0x39e   : > { %v2268_v0 = vmul.f32 0.0625, %v2266_v10 }
 0x3a0   : > { %v2269_v50 = vsub.f32 %v2258_v21, %v2268_v0  ;;  %v2270_v16 = vsub.f32 %v2259_v48, %v2268_v0 }
 0x3a2   : > { %v2271_v38 = vmul.f32 %v2269_v50, %v2269_v50  ;;  %v2272_v62 = vmul.f32 %v2270_v16, %v2270_v16  ;;  %v2300_v46 = vmul.f32 %v2293_v8, %v2269_v50  ;;  %v2301_v59 = vmul.f32 %v2298_v11, %v2270_v16 }
 0x3a4   : > { %v2273_v30 = vadd.f32 %v2272_v62, %v2271_v38 }
 0x3a6   : > { %v2274_v43 = vrot.slane %v2273_v30, 4 }
 0x3a8   : > { %v2275_v14 = vadd.f32 %v2274_v43, %v2273_v30 }
 0x3aa   : > { %v2276_v20 = vrot.slane %v2275_v14, 2 }
 0x3ac   : > { %v2277_v55 = vadd.f32 %v2276_v20, %v2275_v14 }
 0x3ae   : > { %v2278_v12 = vrot.slane %v2277_v55, 1 }
 0x3b0   : > { %v2279_v44 = vadd.f32 %v2278_v12, %v2277_v55 }
 0x3b2   : > { %v2280_v52 = vmul.f32 0.06666667, %v2279_v44 }
 0x3b4   : > { %3058 = vrsqrt.f32 %v2280_v52  ;;  %vm2283_vm2 = vcmp.eq.f32.partialorder %v2280_v52, inf  ;;  %v2286_v9 = vand.u32 2147483648, %v2280_v52  ;;  %vm2285_vm3 = vcmp.eq.f32.partialorder %v2280_v52, 0.0 }
 0x3be   : > { %v3059_v23 = vpop.eup %3058 }
 0x3bf   : > { %v2282_v54 = vmul.f32 %v3059_v23, %v2280_v52 }
 0x3c1   : > { %v2284_v40 = vsel %vm2283_vm2, %v2280_v52, %v2282_v54 }
 0x3c2   : > { %v2287_v32 = vsel %vm2285_vm3, %v2286_v9, %v2284_v40 }
 0x3c3   : > { %v2302_v39 = vadd.f32 1e-06, %v2287_v32 }
 0x3c5   : > { %3060 = vrcp.f32 %v2302_v39 }
 0x3cf   : > { %v3061_v51 = vpop.eup %3060 }
 0x3d0   : > { %v2304_v13 = vmul.f32 %v3061_v51, %v2300_v46  ;;  %v2305_v34 = vmul.f32 %v3061_v51, %v2301_v59 }
 0x3d2   : > { %v2318_v26 = vadd.f32 %v2311_v1, %v2304_v13  ;;  %v2319_v63 = vadd.f32 %v2316_v53, %v2305_v34 }
 0x3d4   : > { %v2320_v45 = vmax.f32 %v2318_v26, 0.0  ;;  %v2321_v15 = vmax.f32 %v2319_v63, 0.0 }
 0x3d6   : > { %2331 = vxpose.xlu0.b32.start [1/2] (short) %v2320_v45, 128 }
 0x3da   : > { %2332 = vxpose.xlu0.b32.end [2/2] (short) %v2321_v15, 128 }
 0x456   : > { %v2347_v4 = vpop.trf.xlu0 }
 0x457   : > { %2790 = vmatprep.mubr.msk.f32.mxu0 %vm2363_vm4, %v2347_v4 }
 0x45a   : > { %v2348_v31 = vpop.trf.xlu0 }
 0x45b   : > { %2791 = vmatmul.mubr.msk.f32.vlgmr.msra.gmra.mrb[4].mxu0 %vm2363_vm4, %v2348_v31 }
 0x45e   : > { %v2349_v56 = vpop.trf.xlu0 }
 0x45f   : > { %2793 = vmatprep.mubr.msk.f32.mxu0 %vm2363_vm4, %v2349_v56 }
 0x462   : > { %v2350_v33 = vpop.trf.xlu0 }
 0x463   : > { %2794 = vmatmul.mubr.msk.f32.gmra.mrb[6].mxu0 %vm2363_vm4, %v2350_v33 }
 0x466   : > { %v2351_v25 = vpop.trf.xlu0 }
 0x467   : > { %2796 = vmatprep.mubr.msk.f32.mxu0 %vm2363_vm4, %v2351_v25 }
 0x46a   : > { %v2352_v47 = vpop.trf.xlu0 }
 0x46b   : > { %2797 = vmatmul.mubr.msk.f32.gmra.mrb[8].mxu0 %vm2363_vm4, %v2352_v47 }
 0x46e   : > { %v2353_v57 = vpop.trf.xlu0 }
 0x46f   : > { %2799 = vmatprep.mubr.msk.f32.mxu0 %vm2363_vm4, %v2353_v57 }
 0x472   : > { %v2354_v60 = vpop.trf.xlu0 }
 0x473   : > { %2800 = vmatmul.mubr.msk.f32.gmra.mrb[10].mxu0 %vm2363_vm4, %v2354_v60 }
 0x476   : > { %v2355_v27 = vpop.trf.xlu0 }
 0x477   : > { %2802 = vmatprep.mubr.msk.f32.mxu1 %vm2363_vm4, %v2355_v27 }
 0x47a   : > { %v2356_v17 = vpop.trf.xlu0 }
 0x47b   : > { %2803 = vmatmul.mubr.msk.f32.vlgmr.msra.gmra.mrb[4].mxu1 %vm2363_vm4, %v2356_v17 }
 0x47e   : > { %v2357_v41 = vpop.trf.xlu0 }
 0x47f   : > { %2805 = vmatprep.mubr.msk.f32.mxu1 %vm2363_vm4, %v2357_v41 }
 0x482   : > { %v2358_v2 = vpop.trf.xlu0 }
 0x483   : > { %2806 = vmatmul.mubr.msk.f32.gmra.mrb[6].mxu1 %vm2363_vm4, %v2358_v2 }
 0x486   : > { %v2359_v6 = vpop.trf.xlu0 }
 0x487   : > { %2808 = vmatprep.mubr.msk.f32.mxu1 %vm2363_vm4, %v2359_v6 }
 0x48a   : > { %v2360_v61 = vpop.trf.xlu0 }
 0x48b   : > { %2809 = vmatmul.mubr.msk.f32.gmra.mrb[8].mxu1 %vm2363_vm4, %v2360_v61 }
 0x48e   : > { %v2361_v29 = vpop.trf.xlu0 }
 0x48f   : > { %2811 = vmatprep.mubr.msk.f32.mxu1 %vm2363_vm4, %v2361_v29 }
 0x492   : > { %v2362_v35 = vpop.trf.xlu0 }
 0x493   : > { %2812 = vmatmul.mubr.msk.f32.gmra.mrb[10].mxu1 %vm2363_vm4, %v2362_v35 }
 0x52e   : > { %v2792_v36 = vpop.f32.mrb[4].mxu0 }
 0x52f   : > { %v2484_v22 = vadd.f32 %v2792_v36, %v2701_v5  ;;  %v2478_v7 = vpop.f32.mrb[5].mxu0 }
 0x530   : > { %v2479_v48 = vadd.f32 %v2701_v5, %v2478_v7 }
 0x531   : > { %2558 = vst [vmem:[%s4682_s25 + $0x8] sm:$0xff] %v2484_v22 }
 0x532   : > { %2557 = vst [vmem:[%s4682_s25] sm:$0xff] %v2479_v48 }
 0x536   : > { %v2795_v21 = vpop.f32.mrb[6].mxu0 }
 0x537   : > { %v2494_v37 = vadd.f32 %v2795_v21, %v2701_v5  ;;  %v2488_v42 = vpop.f32.mrb[7].mxu0 }
 0x538   : > { %v2489_v3 = vadd.f32 %v2701_v5, %v2488_v42 }
 0x539   : > { %2560 = vst [vmem:[%s4682_s25 + $0x18] sm:$0xff] %v2494_v37 }
 0x53a   : > { %2559 = vst [vmem:[%s4682_s25 + $0x10] sm:$0xff] %v2489_v3 }
 0x53e   : > { %v2798_v18 = vpop.f32.mrb[8].mxu0 }
 0x53f   : > { %v2504_v58 = vadd.f32 %v2798_v18, %v2701_v5  ;;  %v2498_v28 = vpop.f32.mrb[9].mxu0 }
 0x540   : > { %v2499_v10 = vadd.f32 %v2701_v5, %v2498_v28 }
 0x541   : > { %2562 = vst [vmem:[%s4682_s25 + $0x28] sm:$0xff] %v2504_v58 }
 0x542   : > { %2561 = vst [vmem:[%s4682_s25 + $0x20] sm:$0xff] %v2499_v10 }
 0x546   : > { %v2801_v0 = vpop.f32.mrb[10].mxu0 }
 0x547   : > { %v2514_v50 = vadd.f32 %v2801_v0, %v2701_v5  ;;  %v2508_v16 = vpop.f32.mrb[11].mxu0 }
 0x548   : > { %v2509_v38 = vadd.f32 %v2701_v5, %v2508_v16 }
 0x549   : > { %2564 = vst [vmem:[%s4682_s25 + $0x38] sm:$0xff] %v2514_v50 }
 0x54a   : > { %2563 = vst [vmem:[%s4682_s25 + $0x30] sm:$0xff] %v2509_v38 }
 0x54e   : > { %v2804_v62 = vpop.f32.mrb[4].mxu1 }
 0x54f   : > { %v2524_v30 = vadd.f32 %v2804_v62, %v2701_v5  ;;  %v2518_v43 = vpop.f32.mrb[5].mxu1 }
 0x550   : > { %v2519_v14 = vadd.f32 %v2701_v5, %v2518_v43 }
 0x551   : > { %2566 = vst [vmem:[%s4682_s25 + $0x48] sm:$0xff] %v2524_v30 }
 0x552   : > { %2565 = vst [vmem:[%s4682_s25 + $0x40] sm:$0xff] %v2519_v14 }
 0x556   : > { %v2807_v20 = vpop.f32.mrb[6].mxu1 }
 0x557   : > { %v2534_v55 = vadd.f32 %v2807_v20, %v2701_v5  ;;  %v2528_v12 = vpop.f32.mrb[7].mxu1 }
 0x558   : > { %v2529_v44 = vadd.f32 %v2701_v5, %v2528_v12 }
 0x559   : > { %2568 = vst [vmem:[%s4682_s25 + $0x58] sm:$0xff] %v2534_v55 }
 0x55a   : > { %2567 = vst [vmem:[%s4682_s25 + $0x50] sm:$0xff] %v2529_v44 }
 0x55e   : > { %v2810_v52 = vpop.f32.mrb[8].mxu1 }
 0x55f   : > { %v2544_v23 = vadd.f32 %v2810_v52, %v2701_v5  ;;  %v2538_v54 = vpop.f32.mrb[9].mxu1 }
 0x560   : > { %v2539_v9 = vadd.f32 %v2701_v5, %v2538_v54 }
 0x561   : > { %2570 = vst [vmem:[%s4682_s25 + $0x68] sm:$0xff] %v2544_v23 }
 0x562   : > { %2569 = vst [vmem:[%s4682_s25 + $0x60] sm:$0xff] %v2539_v9 }
 0x566   : > { %v2813_v40 = vpop.f32.mrb[10].mxu1 }
 0x567   : > { %v2554_v32 = vadd.f32 %v2813_v40, %v2701_v5  ;;  %v2548_v39 = vpop.f32.mrb[11].mxu1 }
 0x568   : > { %v2549_v8 = vadd.f32 %v2701_v5, %v2548_v39 }
 0x569   : > { %2572 = vst [vmem:[%s4682_s25 + $0x78] sm:$0xff] %v2554_v32 }
 0x56a   : > { %2571 = vst [vmem:[%s4682_s25 + $0x70] sm:$0xff] %v2549_v8 }
 0x56b   : > { %3089 = shalt.err (!%p3086_p7)
}
 0x56c   : > { %s3090_s19 = scalar_lea.hbm %s4703_s14, 2048  ;;  %s3094_s28 = scalar_lea.hbm %s4760_s9, 4096 }
 0x56d   : > { %p3091_p10 = scmp.ne.s32.totalorder %s4703_s14, %s3090_s19  ;;  %p3095_p13 = scmp.lt.u32.totalorder %s4703_s14, %s4760_s9 }
 0x56e   : > { %p3096_p0 = scmp.lt.u32.totalorder %s3094_s28, %s3090_s19  ;;  %p3098_p2 = scmp.lt.u32.totalorder %s3090_s19, %s4703_s14 }
 0x56f   : > { %p3092_p11 = pnand %p3091_p10, %p3238_p6 }
 0x570   : > { %p3097_p1 = por %p3096_p0, %p3095_p13 }
 0x571   : > { %p3093_p12 = pneg %p3092_p11 }
 0x572   : > { %p3099_p3 = por %p3098_p2, %p3097_p1 }
 0x574   : > { %p3100_p4 = pnand %p3099_p3, %p3093_p12 }
 0x576   : > { %3103 = shalt.err (!%p3100_p4)
}
 0x577   : > { %s3143_s17 = smov 128   ;;  %s3144_s23 = smov 8  }
 0x578   : > { %2820 = dma.vmem_to_hbm [thread:$0]  (%p3238_p6), %s4705_s27, 2048, %s4703_s14, %s2574_s16, %s3143_s17, %s3143_s17, %s3144_s23  }
 0x579 PF: > { %s2602_s24 = sand.u32 1, %s3126_s30   ;;  %p2823_p5 = pnand %p2687_p9, %p3242_p8 }
 0x57a   : > { %s2603_s19 = scalar_lea.sflag [#allocation5], %s2602_s24 }
 0x57b   : > { %3121 = dma.done.wait (!%p2823_p5), %s2603_s19, 2048  }
 0x57c   : > { %3123 = vsyncadd (!%p2823_p5), %s2603_s19, 4294965248  ;;  %p19_p7 = scmp.ge.s32.totalorder %s3220_s15, 4   ;;  %s4964_s30 = smov %s3130_s10 }
 0x57d   : > { %s4965_s10 = smov %s3134_s11  ;;  %s4966_s11 = smov %s3232_s18 }
 0x57e   : > { %s4967_s12 = smov %s3220_s15  ;;  %21 = sbr.rel (!%p19_p7) target bundleno = 3 (0x3), region = 183 }
 0x585   :  { %2608 = vsyncpa [#allocation5], 1 }
 0x586   :  { %2610 = vsyncpa [#allocation5 + $0x1], 1 }

</bundles_post_ra>
